<compile_context>
chip_gen: v5e
topology: v5e:2x2
jax: 0.10.0
libtpu: 0.0.40
codegen_flags: <defaults>
</compile_context>

<pallas_src>
import functools

import jax
import jax.numpy as jnp
from jax import lax
from jax.experimental import pallas as pl
from jax.experimental.pallas import tpu as pltpu

IN_FEATURES = 1024
HIDDEN = 512
NUM_CLASSES = 8
OUT_PAD = 128          # lane-dense padded output width for the second matmul
BN_EPS = 1e-5
MAX_TILE_N = 512       # keeps per-call VMEM well under the 16 MiB v5e scoped default


# ---------------------------------------------------------------------------
# Kernel A: first Linear + BatchNorm batch-statistics accumulation.
# ---------------------------------------------------------------------------
def fc1_stats_kernel(x_ref, w1_ref, b1_ref, h_ref, sum_ref, sumsq_ref,
                     *, n_valid, tile_n, n_pad):
    i = pl.program_id(0)

    # Linear(1024, 512): bf16 operands on the MXU, f32 accumulation.
    x = x_ref[...].astype(jnp.bfloat16)
    h = jnp.dot(x, w1_ref[...], preferred_element_type=jnp.float32) + b1_ref[...]
    h_ref[...] = h

    # Mask zero-padded rows out of the BatchNorm statistics.
    if n_pad == n_valid:
        hm = h
    else:
        row = i * tile_n + lax.broadcasted_iota(jnp.int32, (tile_n, 1), 0)
        hm = h * (row < n_valid).astype(jnp.float32)

    psum = jnp.sum(hm, axis=0, keepdims=True)          # (1, 512)
    psumsq = jnp.sum(hm * h, axis=0, keepdims=True)    # (1, 512)

    @pl.when(i == 0)
    def _():
        sum_ref[...] = jnp.zeros_like(sum_ref)
        sumsq_ref[...] = jnp.zeros_like(sumsq_ref)

    sum_ref[...] += psum
    sumsq_ref[...] += psumsq


# ---------------------------------------------------------------------------
# Kernel B: BatchNorm (batch stats) + PReLU + second Linear (lane-padded out).
# ---------------------------------------------------------------------------
def bn_prelu_fc2_kernel(h_ref, sum_ref, sumsq_ref, gamma_ref, beta_ref,
                        alpha_ref, w2_ref, b2_ref, o_ref, *, n_valid):
    inv_n = jnp.float32(1.0 / n_valid)
    mean = sum_ref[...] * inv_n                                   # (1, 512)
    var = jnp.maximum(sumsq_ref[...] * inv_n - mean * mean, 0.0)  # biased variance
    # Fold BN into one per-channel scale/shift (single FMA per element).
    scale = gamma_ref[...] * lax.rsqrt(var + BN_EPS)
    shift = beta_ref[...] - mean * scale

    h = h_ref[...] * scale + shift
    h = jnp.where(h >= 0.0, h, alpha_ref[...] * h)                # PReLU(512)
    # TODO(synk): Dropout(0.5) left as identity (eval semantics); training-mode
    # RNG mask (and eval-mode BN running statistics) are not implemented.

    out = jnp.dot(h, w2_ref[...], preferred_element_type=jnp.float32) + b2_ref[...]
    o_ref[...] = out.astype(o_ref.dtype)


def _round_up(x, m):
    return ((x + m - 1) // m) * m


def label_predictor(x, params):
    """x: any shape whose element count is a multiple of 1024 (mirrors .view(-1, 1024))."""
    w1, b1, gamma, beta, alpha, w2, b2 = params
    num_classes = w2.shape[1]

    x2d = jnp.reshape(x, (-1, IN_FEATURES)).astype(jnp.float32)
    n = x2d.shape[0]

    tile_n = min(MAX_TILE_N, _round_up(n, 8))
    n_pad = _round_up(n, tile_n)
    if n_pad != n:
        x2d = jnp.pad(x2d, ((0, n_pad - n), (0, 0)))
    n_tiles = n_pad // tile_n

    # Lane-dense second matmul: pad output width to 128 lanes.
    w2p = jnp.zeros((HIDDEN, OUT_PAD), jnp.float32).at[:, :num_classes].set(w2)
    b2p = jnp.zeros((1, OUT_PAD), jnp.float32).at[:, :num_classes].set(b2)

    # ---- call A: h = x @ W1 + b1, plus per-channel sum / sum-of-squares -----
    kern_a = functools.partial(fc1_stats_kernel, n_valid=n, tile_n=tile_n,
                               n_pad=n_pad)
    cost_a = pl.CostEstimate(
        flops=2 * n_pad * IN_FEATURES * HIDDEN + 4 * n_pad * HIDDEN,
        transcendentals=0,
        bytes_accessed=(n_pad * IN_FEATURES * 4 + IN_FEATURES * HIDDEN * 2
                        + n_pad * HIDDEN * 4 + 3 * HIDDEN * 4),
    )
    h, ch_sum, ch_sumsq = pl.pallas_call(
        kern_a,
        grid=(n_tiles,),
        in_specs=[
            pl.BlockSpec((tile_n, IN_FEATURES), lambda i: (i, 0)),   # x tile
            pl.BlockSpec((IN_FEATURES, HIDDEN), lambda i: (0, 0)),   # W1 (bf16), resident
            pl.BlockSpec((1, HIDDEN), lambda i: (0, 0)),             # b1, resident
        ],
        out_specs=[
            pl.BlockSpec((tile_n, HIDDEN), lambda i: (i, 0)),        # h tile
            pl.BlockSpec((1, HIDDEN), lambda i: (0, 0)),             # sum accumulator
            pl.BlockSpec((1, HIDDEN), lambda i: (0, 0)),             # sumsq accumulator
        ],
        out_shape=[
            jax.ShapeDtypeStruct((n_pad, HIDDEN), jnp.float32),
            jax.ShapeDtypeStruct((1, HIDDEN), jnp.float32),
            jax.ShapeDtypeStruct((1, HIDDEN), jnp.float32),
        ],
        compiler_params=pltpu.CompilerParams(
            dimension_semantics=("arbitrary",),
            vmem_limit_bytes=32 * 1024 * 1024),
        cost_estimate=cost_a,
    )(x2d, w1, b1)

    # ---- call B: BN + PReLU + second Linear over a parallel batch axis ------
    kern_b = functools.partial(bn_prelu_fc2_kernel, n_valid=n)
    cost_b = pl.CostEstimate(
        flops=2 * n_pad * HIDDEN * OUT_PAD + 4 * n_pad * HIDDEN,
        transcendentals=HIDDEN,
        bytes_accessed=(n_pad * HIDDEN * 4 + HIDDEN * OUT_PAD * 4
                        + n_pad * OUT_PAD * 4 + 6 * HIDDEN * 4),
    )
    out_pad = pl.pallas_call(
        kern_b,
        grid=(n_tiles,),
        in_specs=[
            pl.BlockSpec((tile_n, HIDDEN), lambda i: (i, 0)),        # h tile
            pl.BlockSpec((1, HIDDEN), lambda i: (0, 0)),             # sum
            pl.BlockSpec((1, HIDDEN), lambda i: (0, 0)),             # sumsq
            pl.BlockSpec((1, HIDDEN), lambda i: (0, 0)),             # gamma
            pl.BlockSpec((1, HIDDEN), lambda i: (0, 0)),             # beta
            pl.BlockSpec((1, HIDDEN), lambda i: (0, 0)),             # PReLU alpha
            pl.BlockSpec((HIDDEN, OUT_PAD), lambda i: (0, 0)),       # W2 padded
            pl.BlockSpec((1, OUT_PAD), lambda i: (0, 0)),            # b2 padded
        ],
        out_specs=pl.BlockSpec((tile_n, OUT_PAD), lambda i: (i, 0)),
        out_shape=jax.ShapeDtypeStruct((n_pad, OUT_PAD), jnp.float32),
        compiler_params=pltpu.CompilerParams(
            dimension_semantics=("parallel",),
            vmem_limit_bytes=32 * 1024 * 1024),
        cost_estimate=cost_b,
    )(h, ch_sum, ch_sumsq, gamma, beta, alpha, w2p, b2p)

    return out_pad[:n, :num_classes]


def init_params(key):
    """Mirrors the PyTorch module's initialize_weights(): kaiming_normal_
       (fan_in, gain=sqrt(2)) on Linear weights, zero biases, BN gamma=1 /
       beta=0, PReLU alpha=0.25. W1 is stored bf16 (first-matmul operand)."""
    k1, k2 = jax.random.split(key)
    std1 = (2.0 / IN_FEATURES) ** 0.5
    std2 = (2.0 / HIDDEN) ** 0.5
    w1_pt = jax.random.normal(k1, (HIDDEN, IN_FEATURES), jnp.float32) * std1
    w2_pt = jax.random.normal(k2, (NUM_CLASSES, HIDDEN), jnp.float32) * std2
    w1 = w1_pt.T.astype(jnp.bfloat16)              # (1024, 512) bf16 for x @ W layout
    w2 = w2_pt.T                                   # (512, C)    f32
    b1 = jnp.zeros((1, HIDDEN), jnp.float32)
    b2 = jnp.zeros((1, NUM_CLASSES), jnp.float32)
    gamma = jnp.ones((1, HIDDEN), jnp.float32)
    beta = jnp.zeros((1, HIDDEN), jnp.float32)
    alpha = jnp.full((1, HIDDEN), 0.25, jnp.float32)
    return (w1, b1, gamma, beta, alpha, w2, b2)


if __name__ == "__main__":
    key = jax.random.PRNGKey(0)
    pkey, xkey = jax.random.split(key)
    params = init_params(pkey)

    # Feature vector from the DaNN feature extractor; forward views to (-1, 1024):
    # (8, 4, 16, 16) -> 8 samples x 1024 features.
    x = jax.random.normal(xkey, (8, 4, 16, 16), jnp.float32)

    out = label_predictor(x, params)
    jax.block_until_ready(out)
    assert out.shape == (8, NUM_CLASSES)
    assert bool(jnp.all(jnp.isfinite(out)))
    print("KERNEL_OK")
</pallas_src>

<mosaic_0001>
module attributes {stable_mosaic.version = 11 : i64} {
  func.func @fc1_stats_kernel(%arg0: i32, %arg1: memref<8x1024xf32, #tpu.memory_space<vmem>>, %arg2: memref<1024x512xbf16, #tpu.memory_space<vmem>>, %arg3: memref<1x512xf32, #tpu.memory_space<vmem>>, %arg4: memref<8x512xf32, #tpu.memory_space<vmem>>, %arg5: memref<1x512xf32, #tpu.memory_space<vmem>>, %arg6: memref<1x512xf32, #tpu.memory_space<vmem>>) attributes {dimension_semantics = [#tpu.dimension_semantics<arbitrary>], iteration_bounds = array<i64: 1>, scalar_prefetch = 0 : i64, scratch_operands = 0 : i64, tpu.core_type = #tpu.core_type<tc>, window_params = [{transform_indices = @transform_0, window_bounds = array<i64: 8, 1024>}, {pipeline_mode = #tpu.pipeline_mode<synchronous>, transform_indices = @transform_1, window_bounds = array<i64: 1024, 512>}, {pipeline_mode = #tpu.pipeline_mode<synchronous>, transform_indices = @transform_2, window_bounds = array<i64: 1, 512>}, {transform_indices = @transform_3, window_bounds = array<i64: 8, 512>}, {pipeline_mode = #tpu.pipeline_mode<synchronous>, transform_indices = @transform_4, window_bounds = array<i64: 1, 512>}, {pipeline_mode = #tpu.pipeline_mode<synchronous>, transform_indices = @transform_5, window_bounds = array<i64: 1, 512>}]} {
    %c0 = arith.constant 0 : index
    %c0_0 = arith.constant 0 : index
    %0 = vector.load %arg1[%c0, %c0_0] : memref<8x1024xf32, #tpu.memory_space<vmem>>, vector<8x1024xf32>
    %1 = arith.truncf %0 : vector<8x1024xf32> to vector<8x1024xbf16>
    %c0_1 = arith.constant 0 : index
    %c0_2 = arith.constant 0 : index
    %2 = vector.load %arg2[%c0_1, %c0_2] : memref<1024x512xbf16, #tpu.memory_space<vmem>>, vector<1024x512xbf16>
    %cst = arith.constant dense<0.000000e+00> : vector<8x512xf32>
    %3 = tpu.matmul %1, %2, %cst {dimension_numbers = #tpu.dot_dimension_numbers<[1], [0], [0], [1], [0, 0, 1, 1], [], []>} : vector<8x1024xbf16>, vector<1024x512xbf16>, vector<8x512xf32> -> vector<8x512xf32>
    %c0_3 = arith.constant 0 : index
    %c0_4 = arith.constant 0 : index
    %4 = vector.load %arg3[%c0_3, %c0_4] : memref<1x512xf32, #tpu.memory_space<vmem>>, vector<1x512xf32>
    %5 = vector.broadcast %4 : vector<1x512xf32> to vector<8x512xf32>
    %6 = arith.addf %3, %5 : vector<8x512xf32>
    %c0_5 = arith.constant 0 : index
    %c0_6 = arith.constant 0 : index
    %7 = vector.load %arg4[%c0_5, %c0_6] : memref<8x512xf32, #tpu.memory_space<vmem>>, vector<8x512xf32>
    tpu.vector_store %arg4[%c0_5, %c0_6], %6 {strides = array<i32>} : memref<8x512xf32, #tpu.memory_space<vmem>>, vector<8x512xf32>,
    %cst_7 = arith.constant dense<0.000000e+00> : vector<512xf32>
    %8 = vector.multi_reduction <add>, %6, %cst_7 [0] : vector<8x512xf32> to vector<512xf32>
    %9 = vector.shape_cast %8 : vector<512xf32> to vector<1x512xf32>
    %10 = arith.mulf %6, %6 : vector<8x512xf32>
    %cst_8 = arith.constant dense<0.000000e+00> : vector<512xf32>
    %11 = vector.multi_reduction <add>, %10, %cst_8 [0] : vector<8x512xf32> to vector<512xf32>
    %12 = vector.shape_cast %11 : vector<512xf32> to vector<1x512xf32>
    %c0_i32 = arith.constant 0 : i32
    %13 = arith.cmpi eq, %arg0, %c0_i32 : i32
    %14 = arith.extui %13 : i1 to i32
    %c0_i32_9 = arith.constant 0 : i32
    %15 = arith.cmpi ne, %14, %c0_i32_9 : i32
    scf.if %15 {
      %cst_18 = arith.constant 0.000000e+00 : f32
      %22 = vector.broadcast %cst_18 : f32 to vector<1x512xf32>
      %c0_19 = arith.constant 0 : index
      %c0_20 = arith.constant 0 : index
      %23 = vector.load %arg5[%c0_19, %c0_20] : memref<1x512xf32, #tpu.memory_space<vmem>>, vector<1x512xf32>
      tpu.vector_store %arg5[%c0_19, %c0_20], %22 {strides = array<i32>} : memref<1x512xf32, #tpu.memory_space<vmem>>, vector<1x512xf32>,
      %cst_21 = arith.constant 0.000000e+00 : f32
      %24 = vector.broadcast %cst_21 : f32 to vector<1x512xf32>
      %c0_22 = arith.constant 0 : index
      %c0_23 = arith.constant 0 : index
      %25 = vector.load %arg6[%c0_22, %c0_23] : memref<1x512xf32, #tpu.memory_space<vmem>>, vector<1x512xf32>
      tpu.vector_store %arg6[%c0_22, %c0_23], %24 {strides = array<i32>} : memref<1x512xf32, #tpu.memory_space<vmem>>, vector<1x512xf32>,
    } else {
    }
    %c0_10 = arith.constant 0 : index
    %c0_11 = arith.constant 0 : index
    %16 = vector.load %arg5[%c0_10, %c0_11] : memref<1x512xf32, #tpu.memory_space<vmem>>, vector<1x512xf32>
    %17 = arith.addf %16, %9 : vector<1x512xf32>
    %c0_12 = arith.constant 0 : index
    %c0_13 = arith.constant 0 : index
    %18 = vector.load %arg5[%c0_12, %c0_13] : memref<1x512xf32, #tpu.memory_space<vmem>>, vector<1x512xf32>
    tpu.vector_store %arg5[%c0_12, %c0_13], %17 {strides = array<i32>} : memref<1x512xf32, #tpu.memory_space<vmem>>, vector<1x512xf32>,
    %c0_14 = arith.constant 0 : index
    %c0_15 = arith.constant 0 : index
    %19 = vector.load %arg6[%c0_14, %c0_15] : memref<1x512xf32, #tpu.memory_space<vmem>>, vector<1x512xf32>
    %20 = arith.addf %19, %12 : vector<1x512xf32>
    %c0_16 = arith.constant 0 : index
    %c0_17 = arith.constant 0 : index
    %21 = vector.load %arg6[%c0_16, %c0_17] : memref<1x512xf32, #tpu.memory_space<vmem>>, vector<1x512xf32>
    tpu.vector_store %arg6[%c0_16, %c0_17], %20 {strides = array<i32>} : memref<1x512xf32, #tpu.memory_space<vmem>>, vector<1x512xf32>,
    return
  }
  func.func @transform_0(%arg0: i32) -> (i32, i32) {
    %c0_i32 = arith.constant 0 : i32
    %c0_i32_0 = arith.constant 0 : i32
    return %arg0, %c0_i32 : i32, i32
  }
  func.func @transform_1(%arg0: i32) -> (i32, i32) {
    %c0_i32 = arith.constant 0 : i32
    %c0_i32_0 = arith.constant 0 : i32
    %c0_i32_1 = arith.constant 0 : i32
    return %c0_i32, %c0_i32_0 : i32, i32
  }
  func.func @transform_2(%arg0: i32) -> (i32, i32) {
    %c0_i32 = arith.constant 0 : i32
    %c0_i32_0 = arith.constant 0 : i32
    %c0_i32_1 = arith.constant 0 : i32
    return %c0_i32, %c0_i32_0 : i32, i32
  }
  func.func @transform_3(%arg0: i32) -> (i32, i32) {
    %c0_i32 = arith.constant 0 : i32
    %c0_i32_0 = arith.constant 0 : i32
    return %arg0, %c0_i32 : i32, i32
  }
  func.func @transform_4(%arg0: i32) -> (i32, i32) {
    %c0_i32 = arith.constant 0 : i32
    %c0_i32_0 = arith.constant 0 : i32
    %c0_i32_1 = arith.constant 0 : i32
    return %c0_i32, %c0_i32_0 : i32, i32
  }
  func.func @transform_5(%arg0: i32) -> (i32, i32) {
    %c0_i32 = arith.constant 0 : i32
    %c0_i32_0 = arith.constant 0 : i32
    %c0_i32_1 = arith.constant 0 : i32
    return %c0_i32, %c0_i32_0 : i32, i32
  }
}

</mosaic_0001>

<bundles_post_ra>
// kernel: tpu_custom_call.1
= control target key start
LH: loop header
LB: loop body
LE: loop exit
PB: predicated region body
PF: predicated region fallthrough
CT: control target
= control target key end

     0   :  { %11 = vsyncpa [#allocation3], 0  ;;  %s3786_s0 = inlined_call_operand.hbm [shape: f32[8,1024], index: 0, kind: input, shape index: {}]   ;;  %s3787_s1 = inlined_call_operand.hbm [shape: bf16[1024,512], index: 1, kind: input, shape index: {}]   ;;  %s3788_s2 = inlined_call_operand.hbm [shape: f32[1,512], index: 2, kind: input, shape index: {}]   ;;  %s3789_s3 = inlined_call_operand.hbm [shape: f32[8,512], index: 3, kind: output, shape index: {0}]   ;;  %s3790_s4 = inlined_call_operand.hbm [shape: f32[1,512], index: 4, kind: output, shape index: {1}]   ;;  %s3791_s5 = inlined_call_operand.hbm [shape: f32[1,512], index: 5, kind: output, shape index: {2}]  }
   0x1   :  { %12 = vsyncpa [#allocation6], 0 }
   0x2   :  { %13 = vsyncpa [#allocation4], 0  ;;  %s30_s20 = sshll.u32 %s3787_s1, 4  ;;  %s31_s20 = int_to_ptr.hbm [resolvable:$true] %s30_s20 }
   0x3   :  { %14 = vsyncpa [#allocation10], 0  ;;  %s3631_s21 = smov [#allocation5]   ;;  %s20_s25 = sshll.u32 %s3786_s0, 4  ;;  %s21_s25 = int_to_ptr.hbm [resolvable:$true] %s20_s25 }
   0x4   :  { %s32_s22 = sshll.u32 %s3631_s21, 4  ;;  %s3632_s26 = smov 256   ;;  %s33_s22 = int_to_ptr.vmem [resolvable:$true] %s32_s22 }
   0x5   :  { %s3633_s27 = smov 16   ;;  %s3634_s28 = smov [#allocation2]  }
   0x6   :  { %38 = dma.hbm_to_vmem [thread:$0]  %s31_s20, 32768, %s33_s22, [#allocation6], %s3632_s26, %s3632_s26, %s3633_s27  }
   0x7   :  { %s22_s29 = sshll.u32 %s3634_s28, 4  ;;  %s44_s7 = sshll.u32 %s3788_s2, 4  ;;  %s23_s29 = int_to_ptr.vmem [resolvable:$true] %s22_s29  ;;  %s45_s7 = int_to_ptr.hbm [resolvable:$true] %s44_s7 }
   0x8   :  { %25 = dma.hbm_to_vmem [thread:$0]  %s21_s25, 1024, %s23_s29, [#allocation3]  }
   0x9   :  { %s3635_s1 = smov [#allocation7]  }
   0xa   :  { %s46_s8 = sshll.u32 %s3635_s1, 4  ;;  %s47_s8 = int_to_ptr.vmem [resolvable:$true] %s46_s8 }
   0xb   :  { %49 = dma.hbm_to_vmem [thread:$0]  %s45_s7, 64, %s47_s8, [#allocation6]  }
   0xc   :  { %3623 = dma.done.wait [#allocation3], 1024  }
   0xd   :  { %3624 = vsyncadd [#allocation3], 4294966272 }
   0xe   :  { %3625 = dma.done.wait [#allocation6], 32832  }
   0xf   :  { %3626 = vsyncadd [#allocation6], 4294934464  ;;  %v2304_v0 = vld [vmem:[#allocation5 + $0xe0] sm:$0xf]  ;;  %v3244_v1 = vld [vmem:[#allocation5 + $0xec] sm:$0xf0] }
  0x10   :  { %v2432_v2 = vld [vmem:[#allocation5 + $0x1e0] sm:$0xf]  ;;  %v2305_v3 = vor.u32 %v3244_v1, %v2304_v0  ;;  %v3276_v4 = vld [vmem:[#allocation5 + $0x1ec] sm:$0xf0]  ;;  %vm2114_vm0 = vcmask 1040384   ;;  %s3637_s0 = smov [#allocation8]  }
  0x11   :  { %v2560_v5 = vld [vmem:[#allocation5 + $0x2e0] sm:$0xf]  ;;  %v3308_v6 = vld [vmem:[#allocation5 + $0x2ec] sm:$0xf0]  ;;  %v2433_v7 = vor.u32 %v3276_v4, %v2432_v2  ;;  %s2146_s2 = sshll.u32 %s3637_s0, 4  ;;  %s2148_s11 = sshll.u32 %s3789_s3, 4  ;;  %s2147_s2 = int_to_ptr.vmem [resolvable:$true] %s2146_s2  ;;  %s2149_s11 = int_to_ptr.hbm [resolvable:$true] %s2148_s11 }
  0x12   :  { %v2561_v8 = vor.u32 %v3308_v6, %v2560_v5  ;;  %v2688_v9 = vld [vmem:[#allocation5 + $0x3e0] sm:$0xf]  ;;  %v3340_v10 = vld [vmem:[#allocation5 + $0x3ec] sm:$0xf0]  ;;  %1624 = vmatpush.bf16.msra.mxu0 %v2305_v3  ;;  %vm2116_vm2 = vcmask 1042434   ;;  %vm2118_vm3 = vcmask 1041408  }
  0x13   :  { %v2288_v11 = vld [vmem:[#allocation5 + $0xc0] sm:$0xf]  ;;  %v2689_v12 = vor.u32 %v3340_v10, %v2688_v9  ;;  %v3240_v13 = vld [vmem:[#allocation5 + $0xcc] sm:$0xf0]  ;;  %1637 = vmatpush.bf16.msra.mxu1 %v2433_v7  ;;  %s3638_s3 = smov [#allocation9]   ;;  %s2159_s15 = sshll.u32 %s3790_s4, 4  ;;  %s2160_s15 = int_to_ptr.hbm [resolvable:$true] %s2159_s15 }
  0x14   :  { %v2416_v14 = vld [vmem:[#allocation5 + $0x1c0] sm:$0xf]  ;;  %v3272_v15 = vld [vmem:[#allocation5 + $0x1cc] sm:$0xf0]  ;;  %1650 = vmatpush.bf16.msra.mxu2 %v2561_v8  ;;  %v2289_v16 = vor.u32 %v3240_v13, %v2288_v11  ;;  %s2157_s12 = sshll.u32 %s3638_s3, 4  ;;  %s3639_s16 = smov [#allocation11]   ;;  %s2158_s12 = int_to_ptr.vmem [resolvable:$true] %s2157_s12 }
  0x15   :  { %v2417_v17 = vor.u32 %v3272_v15, %v2416_v14  ;;  %v2544_v18 = vld [vmem:[#allocation5 + $0x2c0] sm:$0xf]  ;;  %v3304_v19 = vld [vmem:[#allocation5 + $0x2cc] sm:$0xf0]  ;;  %1663 = vmatpush.bf16.msra.mxu3 %v2689_v12  ;;  %s2168_s17 = sshll.u32 %s3639_s16, 4  ;;  %s2170_s20 = sshll.u32 %s3791_s5, 4  ;;  %s2169_s17 = int_to_ptr.vmem [resolvable:$true] %s2168_s17  ;;  %s2171_s20 = int_to_ptr.hbm [resolvable:$true] %s2170_s20 }
  0x16   :  { %v2672_v20 = vld [vmem:[#allocation5 + $0x3c0] sm:$0xf]  ;;  %v2545_v21 = vor.u32 %v3304_v19, %v2544_v18  ;;  %v3336_v22 = vld [vmem:[#allocation5 + $0x3cc] sm:$0xf0]  ;;  %1625 = vmatpush.bf16.msra.mxu0 %v2289_v16 }
  0x17   :  { %v2272_v23 = vld [vmem:[#allocation5 + $0xa0] sm:$0xf]  ;;  %v3236_v24 = vld [vmem:[#allocation5 + $0xac] sm:$0xf0]  ;;  %v2673_v25 = vor.u32 %v3336_v22, %v2672_v20  ;;  %1638 = vmatpush.bf16.msra.mxu1 %v2417_v17 }
  0x18   :  { %v2400_v26 = vld [vmem:[#allocation5 + $0x1a0] sm:$0xf]  ;;  %v3268_v27 = vld [vmem:[#allocation5 + $0x1ac] sm:$0xf0]  ;;  %v2273_v29 = vor.u32 %v3236_v24, %v2272_v23  ;;  %1651 = vmatpush.bf16.msra.mxu2 %v2545_v21 }
  0x19   :  { %v2528_v28 = vld [vmem:[#allocation5 + $0x2a0] sm:$0xf]  ;;  %v3300_v30 = vld [vmem:[#allocation5 + $0x2ac] sm:$0xf0]  ;;  %v2401_v33 = vor.u32 %v3268_v27, %v2400_v26  ;;  %1664 = vmatpush.bf16.msra.mxu3 %v2673_v25 }
  0x1a   :  { %v2656_v31 = vld [vmem:[#allocation5 + $0x3a0] sm:$0xf]  ;;  %v3332_v32 = vld [vmem:[#allocation5 + $0x3ac] sm:$0xf0]  ;;  %v2529_v34 = vor.u32 %v3300_v30, %v2528_v28  ;;  %1626 = vmatpush.bf16.msra.mxu0 %v2273_v29 }
  0x1b   :  { %v2256_v35 = vld [vmem:[#allocation5 + $0x80] sm:$0xf]  ;;  %v3232_v36 = vld [vmem:[#allocation5 + $0x8c] sm:$0xf0]  ;;  %v2657_v38 = vor.u32 %v3332_v32, %v2656_v31  ;;  %1639 = vmatpush.bf16.msra.mxu1 %v2401_v33 }
  0x1c   :  { %v2384_v37 = vld [vmem:[#allocation5 + $0x180] sm:$0xf]  ;;  %v3264_v39 = vld [vmem:[#allocation5 + $0x18c] sm:$0xf0]  ;;  %v2257_v44 = vor.u32 %v3232_v36, %v2256_v35  ;;  %1652 = vmatpush.bf16.msra.mxu2 %v2529_v34 }
  0x1d   :  { %v2512_v40 = vld [vmem:[#allocation5 + $0x280] sm:$0xf]  ;;  %v3296_v41 = vld [vmem:[#allocation5 + $0x28c] sm:$0xf0]  ;;  %v2385_v45 = vor.u32 %v3264_v39, %v2384_v37  ;;  %1665 = vmatpush.bf16.msra.mxu3 %v2657_v38 }
  0x1e   :  { %v2640_v42 = vld [vmem:[#allocation5 + $0x380] sm:$0xf]  ;;  %v3328_v43 = vld [vmem:[#allocation5 + $0x38c] sm:$0xf0]  ;;  %v2513_v46 = vor.u32 %v3296_v41, %v2512_v40  ;;  %1627 = vmatpush.bf16.msra.mxu0 %v2257_v44 }
  0x1f   :  { %v2240_v47 = vld [vmem:[#allocation5 + $0x60] sm:$0xf]  ;;  %v3228_v48 = vld [vmem:[#allocation5 + $0x6c] sm:$0xf0]  ;;  %v2641_v50 = vor.u32 %v3328_v43, %v2640_v42  ;;  %1640 = vmatpush.bf16.msra.mxu1 %v2385_v45 }
  0x20   :  { %v2368_v49 = vld [vmem:[#allocation5 + $0x160] sm:$0xf]  ;;  %v3260_v51 = vld [vmem:[#allocation5 + $0x16c] sm:$0xf0]  ;;  %v2241_v56 = vor.u32 %v3228_v48, %v2240_v47  ;;  %1653 = vmatpush.bf16.msra.mxu2 %v2513_v46 }
  0x21   :  { %v2496_v52 = vld [vmem:[#allocation5 + $0x260] sm:$0xf]  ;;  %v3292_v53 = vld [vmem:[#allocation5 + $0x26c] sm:$0xf0]  ;;  %v2369_v57 = vor.u32 %v3260_v51, %v2368_v49  ;;  %1666 = vmatpush.bf16.msra.mxu3 %v2641_v50 }
  0x22   :  { %v2624_v54 = vld [vmem:[#allocation5 + $0x360] sm:$0xf]  ;;  %v3324_v55 = vld [vmem:[#allocation5 + $0x36c] sm:$0xf0]  ;;  %v2497_v58 = vor.u32 %v3292_v53, %v2496_v52  ;;  %1628 = vmatpush.bf16.msra.mxu0 %v2241_v56 }
  0x23   :  { %v2224_v59 = vld [vmem:[#allocation5 + $0x40] sm:$0xf]  ;;  %v3224_v60 = vld [vmem:[#allocation5 + $0x4c] sm:$0xf0]  ;;  %v2625_v62 = vor.u32 %v3324_v55, %v2624_v54  ;;  %1641 = vmatpush.bf16.msra.mxu1 %v2369_v57 }
  0x24   :  { %v2352_v61 = vld [vmem:[#allocation5 + $0x140] sm:$0xf]  ;;  %v3256_v63 = vld [vmem:[#allocation5 + $0x14c] sm:$0xf0]  ;;  %v2225_v4 = vor.u32 %v3224_v60, %v2224_v59  ;;  %1654 = vmatpush.bf16.msra.mxu2 %v2497_v58 }
  0x25   :  { %v2480_v0 = vld [vmem:[#allocation5 + $0x240] sm:$0xf]  ;;  %v3288_v1 = vld [vmem:[#allocation5 + $0x24c] sm:$0xf0]  ;;  %v2353_v5 = vor.u32 %v3256_v63, %v2352_v61  ;;  %1667 = vmatpush.bf16.msra.mxu3 %v2625_v62 }
  0x26   :  { %v2608_v2 = vld [vmem:[#allocation5 + $0x340] sm:$0xf]  ;;  %v3320_v3 = vld [vmem:[#allocation5 + $0x34c] sm:$0xf0]  ;;  %v2481_v6 = vor.u32 %v3288_v1, %v2480_v0  ;;  %1629 = vmatpush.bf16.msra.mxu0 %v2225_v4  ;;  %v65_v1 = vld [vmem:[#allocation2 + $0x18] sm:$0xff] }
  0x27   :  { %v2208_v7 = vld [vmem:[#allocation5 + $0x20] sm:$0xf]  ;;  %v3220_v8 = vld [vmem:[#allocation5 + $0x2c] sm:$0xf0]  ;;  %v2609_v10 = vor.u32 %v3320_v3, %v2608_v2  ;;  %1642 = vmatpush.bf16.msra.mxu1 %v2353_v5  ;;  %v63_v2 = vld [vmem:[#allocation2 + $0x8] sm:$0xff] }
  0x28   :  { %v2336_v9 = vld [vmem:[#allocation5 + $0x120] sm:$0xf]  ;;  %v3252_v11 = vld [vmem:[#allocation5 + $0x12c] sm:$0xf0]  ;;  %v2209_v16 = vor.u32 %v3220_v8, %v2208_v7  ;;  %1655 = vmatpush.bf16.msra.mxu2 %v2481_v6  ;;  %v3684_v6 = vpack.c.bf16 %v65_v1, %v65_v1  ;;  %v3686_v7 = vpack.c.bf16 %v63_v2, %v63_v2 }
  0x29   :  { %v2464_v12 = vld [vmem:[#allocation5 + $0x220] sm:$0xf]  ;;  %v3284_v13 = vld [vmem:[#allocation5 + $0x22c] sm:$0xf0]  ;;  %v2337_v19 = vor.u32 %v3252_v11, %v2336_v9  ;;  %1668 = vmatpush.bf16.msra.mxu3 %v2609_v10 }
  0x2a   :  { %v2592_v14 = vld [vmem:[#allocation5 + $0x320] sm:$0xf]  ;;  %v3316_v15 = vld [vmem:[#allocation5 + $0x32c] sm:$0xf0]  ;;  %v2465_v20 = vor.u32 %v3284_v13, %v2464_v12  ;;  %1630 = vmatpush.bf16.msra.mxu0 %v2209_v16 }
  0x2b   :  { %v2192_v17 = vld [vmem:[#allocation5] sm:$0xf]  ;;  %v3216_v18 = vld [vmem:[#allocation5 + $0xc] sm:$0xf0]  ;;  %v2593_v24 = vor.u32 %v3316_v15, %v2592_v14  ;;  %1643 = vmatpush.bf16.msra.mxu1 %v2337_v19 }
  0x2c   :  { %v2320_v21 = vld [vmem:[#allocation5 + $0x100] sm:$0xf]  ;;  %v3248_v22 = vld [vmem:[#allocation5 + $0x10c] sm:$0xf0]  ;;  %v2193_v31 = vor.u32 %v3216_v18, %v2192_v17  ;;  %1656 = vmatpush.bf16.msra.mxu2 %v2465_v20 }
  0x2d   :  { %v2448_v23 = vld [vmem:[#allocation5 + $0x200] sm:$0xf]  ;;  %v3280_v25 = vld [vmem:[#allocation5 + $0x20c] sm:$0xf0]  ;;  %v2321_v35 = vor.u32 %v3248_v22, %v2320_v21  ;;  %1669 = vmatpush.bf16.msra.mxu3 %v2593_v24 }
  0x2e   :  { %v2576_v26 = vld [vmem:[#allocation5 + $0x300] sm:$0xf]  ;;  %v3312_v27 = vld [vmem:[#allocation5 + $0x30c] sm:$0xf0]  ;;  %v2449_v36 = vor.u32 %v3280_v25, %v2448_v23  ;;  %1631 = vmatpush.bf16.msra.mxu0 %v2193_v31 }
  0x2f   :  { %v2816_v28 = vld [vmem:[#allocation5 + $0x4e0] sm:$0xf]  ;;  %v3372_v29 = vld [vmem:[#allocation5 + $0x4ec] sm:$0xf0]  ;;  %v2577_v39 = vor.u32 %v3312_v27, %v2576_v26  ;;  %1644 = vmatpush.bf16.msra.mxu1 %v2321_v35 }
  0x30   :  { %v2944_v30 = vld [vmem:[#allocation5 + $0x5e0] sm:$0xf]  ;;  %v3404_v32 = vld [vmem:[#allocation5 + $0x5ec] sm:$0xf0]  ;;  %v2817_v40 = vor.u32 %v3372_v29, %v2816_v28  ;;  %1657 = vmatpush.bf16.msra.mxu2 %v2449_v36 }
  0x31   :  { %v3072_v33 = vld [vmem:[#allocation5 + $0x6e0] sm:$0xf]  ;;  %v3436_v34 = vld [vmem:[#allocation5 + $0x6ec] sm:$0xf0]  ;;  %v2945_v41 = vor.u32 %v3404_v32, %v2944_v30  ;;  %1670 = vmatpush.bf16.msra.mxu3 %v2577_v39 }
  0x32   :  { %v3200_v37 = vld [vmem:[#allocation5 + $0x7e0] sm:$0xf]  ;;  %v3468_v38 = vld [vmem:[#allocation5 + $0x7ec] sm:$0xf0]  ;;  %v3073_v42 = vor.u32 %v3436_v34, %v3072_v33  ;;  %1676 = vmatpush.bf16.msrb.mxu0 %v2817_v40  ;;  %1645 = vmatmul.bf16.vlgmr.msra.gmra.mxu1 %v3686_v7 }
  0x33   :  { %v2800_v43 = vld [vmem:[#allocation5 + $0x4c0] sm:$0xf]  ;;  %v3368_v44 = vld [vmem:[#allocation5 + $0x4cc] sm:$0xf0]  ;;  %v3201_v46 = vor.u32 %v3468_v38, %v3200_v37  ;;  %1689 = vmatpush.bf16.msrb.mxu1 %v2945_v41 }
  0x34   :  { %v2928_v45 = vld [vmem:[#allocation5 + $0x5c0] sm:$0xf]  ;;  %v3400_v47 = vld [vmem:[#allocation5 + $0x5cc] sm:$0xf0]  ;;  %v2801_v53 = vor.u32 %v3368_v44, %v2800_v43  ;;  %1702 = vmatpush.bf16.msrb.mxu2 %v3073_v42  ;;  %1671 = vmatmul.bf16.vlgmr.msra.gmra.mxu3 %v3684_v6 }
  0x35   :  { %v3056_v48 = vld [vmem:[#allocation5 + $0x6c0] sm:$0xf]  ;;  %v3432_v49 = vld [vmem:[#allocation5 + $0x6cc] sm:$0xf0]  ;;  %v2929_v58 = vor.u32 %v3400_v47, %v2928_v45  ;;  %1715 = vmatpush.bf16.msrb.mxu3 %v3201_v46 }
  0x36   :  { %v3184_v50 = vld [vmem:[#allocation5 + $0x7c0] sm:$0xf]  ;;  %v3464_v51 = vld [vmem:[#allocation5 + $0x7cc] sm:$0xf0]  ;;  %v3057_v59 = vor.u32 %v3432_v49, %v3056_v48  ;;  %1677 = vmatpush.bf16.msrb.mxu0 %v2801_v53 }
  0x37   :  { %v64_v52 = vld [vmem:[#allocation2 + $0x10] sm:$0xff]  ;;  %v2784_v54 = vld [vmem:[#allocation5 + $0x4a0] sm:$0xf]  ;;  %v3185_v63 = vor.u32 %v3464_v51, %v3184_v50  ;;  %1690 = vmatpush.bf16.msrb.mxu1 %v2929_v58 }
  0x38   :  { %v3364_v55 = vld [vmem:[#allocation5 + $0x4ac] sm:$0xf0]  ;;  %v2912_v56 = vld [vmem:[#allocation5 + $0x5a0] sm:$0xf]  ;;  %v3679_v57 = vpack.c.bf16 %v64_v52, %v64_v52  ;;  %1703 = vmatpush.bf16.msrb.mxu2 %v3057_v59 }
  0x39   :  { %v3396_v60 = vld [vmem:[#allocation5 + $0x5ac] sm:$0xf0]  ;;  %v3040_v61 = vld [vmem:[#allocation5 + $0x6a0] sm:$0xf]  ;;  %v2785_v8 = vor.u32 %v3364_v55, %v2784_v54  ;;  %1716 = vmatpush.bf16.msrb.mxu3 %v3185_v63 }
  0x3a   :  { %v3428_v62 = vld [vmem:[#allocation5 + $0x6ac] sm:$0xf0]  ;;  %1658 = vmatmul.bf16.vlgmr.msra.gmra.mxu2 %v3679_v57  ;;  %v62_v0 = vld [vmem:[#allocation2] sm:$0xff]  ;;  %v2913_v9 = vor.u32 %v3396_v60, %v2912_v56 }
  0x3b   :  { %v3168_v3 = vld [vmem:[#allocation5 + $0x7a0] sm:$0xf]  ;;  %v3460_v4 = vld [vmem:[#allocation5 + $0x7ac] sm:$0xf0]  ;;  %v3682_v5 = vpack.c.bf16 %v62_v0, %v62_v0  ;;  %v3041_v10 = vor.u32 %v3428_v62, %v3040_v61  ;;  %1678 = vmatpush.bf16.msrb.mxu0 %v2785_v8  ;;  %v3242_v8 = vld [vmem:[#allocation5 + $0xe4] sm:$0xf] }
  0x3c   :  { %v2768_v11 = vld [vmem:[#allocation5 + $0x480] sm:$0xf]  ;;  %v3360_v12 = vld [vmem:[#allocation5 + $0x48c] sm:$0xf0]  ;;  %v3169_v14 = vor.u32 %v3460_v4, %v3168_v3  ;;  %1691 = vmatpush.bf16.msrb.mxu1 %v2913_v9  ;;  %v2306_v9 = vld [vmem:[#allocation5 + $0xf0] sm:$0xf0] }
  0x3d   :  { %v2896_v13 = vld [vmem:[#allocation5 + $0x580] sm:$0xf]  ;;  %v3392_v15 = vld [vmem:[#allocation5 + $0x58c] sm:$0xf0]  ;;  %1632 = vmatmul.bf16.vlgmr.msra.gmra.mxu0 %v3682_v5  ;;  %v2769_v20 = vor.u32 %v3360_v12, %v2768_v11  ;;  %1704 = vmatpush.bf16.msrb.mxu2 %v3041_v10  ;;  %v3274_v10 = vld [vmem:[#allocation5 + $0x1e4] sm:$0xf] }
  0x3e   :  { %v3024_v16 = vld [vmem:[#allocation5 + $0x680] sm:$0xf]  ;;  %v3424_v17 = vld [vmem:[#allocation5 + $0x68c] sm:$0xf0]  ;;  %v2897_v21 = vor.u32 %v3392_v15, %v2896_v13  ;;  %1717 = vmatpush.bf16.msrb.mxu3 %v3169_v14  ;;  %v2434_v12 = vld [vmem:[#allocation5 + $0x1f0] sm:$0xf0] }
  0x3f   :  { %v3152_v18 = vld [vmem:[#allocation5 + $0x780] sm:$0xf]  ;;  %v3456_v19 = vld [vmem:[#allocation5 + $0x78c] sm:$0xf0]  ;;  %v3025_v22 = vor.u32 %v3424_v17, %v3024_v16  ;;  %1679 = vmatpush.bf16.msrb.mxu0 %v2769_v20  ;;  %v3306_v13 = vld [vmem:[#allocation5 + $0x2e4] sm:$0xf] }
  0x40   :  { %v2752_v23 = vld [vmem:[#allocation5 + $0x460] sm:$0xf]  ;;  %v3356_v24 = vld [vmem:[#allocation5 + $0x46c] sm:$0xf0]  ;;  %v3153_v26 = vor.u32 %v3456_v19, %v3152_v18  ;;  %1692 = vmatpush.bf16.msrb.mxu1 %v2897_v21  ;;  %v2562_v14 = vld [vmem:[#allocation5 + $0x2f0] sm:$0xf0]  ;;  %v2309_v21 = vor.u32 %v3242_v8, %v2306_v9 }
  0x41   :  { %v2880_v25 = vld [vmem:[#allocation5 + $0x560] sm:$0xf]  ;;  %v3388_v27 = vld [vmem:[#allocation5 + $0x56c] sm:$0xf0]  ;;  %v2753_v32 = vor.u32 %v3356_v24, %v2752_v23  ;;  %1705 = vmatpush.bf16.msrb.mxu2 %v3025_v22  ;;  %v3338_v17 = vld [vmem:[#allocation5 + $0x3e4] sm:$0xf] }
  0x42   :  { %v3008_v28 = vld [vmem:[#allocation5 + $0x660] sm:$0xf]  ;;  %v3420_v29 = vld [vmem:[#allocation5 + $0x66c] sm:$0xf0]  ;;  %v2881_v33 = vor.u32 %v3388_v27, %v2880_v25  ;;  %1718 = vmatpush.bf16.msrb.mxu3 %v3153_v26  ;;  %v2690_v18 = vld [vmem:[#allocation5 + $0x3f0] sm:$0xf0]  ;;  %v2437_v25 = vor.u32 %v3274_v10, %v2434_v12  ;;  %v2565_v26 = vor.u32 %v3306_v13, %v2562_v14 }
  0x43   :  { %v3136_v30 = vld [vmem:[#allocation5 + $0x760] sm:$0xf]  ;;  %v3452_v31 = vld [vmem:[#allocation5 + $0x76c] sm:$0xf0]  ;;  %v3009_v34 = vor.u32 %v3420_v29, %v3008_v28  ;;  %1680 = vmatpush.bf16.msrb.mxu0 %v2753_v32  ;;  %v69_v23 = vld [vmem:[#allocation2 + $0x38] sm:$0xff] }
  0x44   :  { %v2736_v35 = vld [vmem:[#allocation5 + $0x440] sm:$0xf]  ;;  %v3352_v36 = vld [vmem:[#allocation5 + $0x44c] sm:$0xf0]  ;;  %v3137_v38 = vor.u32 %v3452_v31, %v3136_v30  ;;  %1693 = vmatpush.bf16.msrb.mxu1 %v2881_v33  ;;  %v3238_v24 = vld [vmem:[#allocation5 + $0xc4] sm:$0xf]  ;;  %v2693_v30 = vor.u32 %v3338_v17, %v2690_v18 }
  0x45   :  { %v2864_v37 = vld [vmem:[#allocation5 + $0x540] sm:$0xf]  ;;  %v3384_v39 = vld [vmem:[#allocation5 + $0x54c] sm:$0xf0]  ;;  %v2737_v44 = vor.u32 %v3352_v36, %v2736_v35  ;;  %1706 = vmatpush.bf16.msrb.mxu2 %v3009_v34  ;;  %v2290_v27 = vld [vmem:[#allocation5 + $0xd0] sm:$0xf0]  ;;  %v3695_v36 = vpack.c.bf16 %v69_v23, %v69_v23 }
  0x46   :  { %v2992_v40 = vld [vmem:[#allocation5 + $0x640] sm:$0xf]  ;;  %v3416_v41 = vld [vmem:[#allocation5 + $0x64c] sm:$0xf0]  ;;  %v2865_v45 = vor.u32 %v3384_v39, %v2864_v37  ;;  %1719 = vmatpush.bf16.msrb.mxu3 %v3137_v38  ;;  %v3270_v28 = vld [vmem:[#allocation5 + $0x1c4] sm:$0xf]  ;;  %v2293_v39 = vor.u32 %v3238_v24, %v2290_v27 }
  0x47   :  { %v3120_v42 = vld [vmem:[#allocation5 + $0x740] sm:$0xf]  ;;  %v3448_v43 = vld [vmem:[#allocation5 + $0x74c] sm:$0xf0]  ;;  %v2993_v46 = vor.u32 %v3416_v41, %v2992_v40  ;;  %1681 = vmatpush.bf16.msrb.mxu0 %v2737_v44  ;;  %v67_v29 = vld [vmem:[#allocation2 + $0x28] sm:$0xff] }
  0x48   :  { %v2720_v47 = vld [vmem:[#allocation5 + $0x420] sm:$0xf]  ;;  %v3348_v48 = vld [vmem:[#allocation5 + $0x42c] sm:$0xf0]  ;;  %v3121_v50 = vor.u32 %v3448_v43, %v3120_v42  ;;  %1694 = vmatpush.bf16.msrb.mxu1 %v2865_v45  ;;  %v2418_v32 = vld [vmem:[#allocation5 + $0x1d0] sm:$0xf0]  ;;  %v3697_v40 = vpack.c.bf16 %v67_v29, %v67_v29 }
  0x49   :  { %v2848_v49 = vld [vmem:[#allocation5 + $0x520] sm:$0xf]  ;;  %v3380_v51 = vld [vmem:[#allocation5 + $0x52c] sm:$0xf0]  ;;  %v2721_v56 = vor.u32 %v3348_v48, %v2720_v47  ;;  %1707 = vmatpush.bf16.msrb.mxu2 %v2993_v46  ;;  %v3302_v33 = vld [vmem:[#allocation5 + $0x2c4] sm:$0xf]  ;;  %v2421_v41 = vor.u32 %v3270_v28, %v2418_v32 }
  0x4a   :  { %v2976_v52 = vld [vmem:[#allocation5 + $0x620] sm:$0xf]  ;;  %v3412_v53 = vld [vmem:[#allocation5 + $0x62c] sm:$0xf0]  ;;  %v2849_v60 = vor.u32 %v3380_v51, %v2848_v49  ;;  %1720 = vmatpush.bf16.msrb.mxu3 %v3121_v50  ;;  %v2546_v34 = vld [vmem:[#allocation5 + $0x2d0] sm:$0xf0] }
  0x4b   :  { %v3104_v54 = vld [vmem:[#allocation5 + $0x720] sm:$0xf]  ;;  %v3444_v55 = vld [vmem:[#allocation5 + $0x72c] sm:$0xf0]  ;;  %v2977_v61 = vor.u32 %v3412_v53, %v2976_v52  ;;  %1682 = vmatpush.bf16.msrb.mxu0 %v2721_v56  ;;  %v3334_v37 = vld [vmem:[#allocation5 + $0x3c4] sm:$0xf]  ;;  %v2549_v42 = vor.u32 %v3302_v33, %v2546_v34 }
  0x4c   :  { %v2704_v58 = vld [vmem:[#allocation5 + $0x400] sm:$0xf]  ;;  %v3344_v59 = vld [vmem:[#allocation5 + $0x40c] sm:$0xf0]  ;;  %v3105_v1 = vor.u32 %v3444_v55, %v3104_v54  ;;  %1695 = vmatpush.bf16.msrb.mxu1 %v2849_v60  ;;  %v2674_v38 = vld [vmem:[#allocation5 + $0x3d0] sm:$0xf0] }
  0x4d   :  { %v2832_v62 = vld [vmem:[#allocation5 + $0x500] sm:$0xf]  ;;  %v3376_v63 = vld [vmem:[#allocation5 + $0x50c] sm:$0xf0]  ;;  %v2705_v11 = vor.u32 %v3344_v59, %v2704_v58  ;;  %1708 = vmatpush.bf16.msrb.mxu2 %v2977_v61  ;;  %v3234_v43 = vld [vmem:[#allocation5 + $0xa4] sm:$0xf]  ;;  %v2677_v46 = vor.u32 %v3334_v37, %v2674_v38 }
  0x4e   :  { %v2960_v0 = vld [vmem:[#allocation5 + $0x600] sm:$0xf]  ;;  %v3408_v2 = vld [vmem:[#allocation5 + $0x60c] sm:$0xf0]  ;;  %v2833_v15 = vor.u32 %v3376_v63, %v2832_v62  ;;  %1721 = vmatpush.bf16.msrb.mxu3 %v3105_v1  ;;  %v2274_v44 = vld [vmem:[#allocation5 + $0xb0] sm:$0xf0] }
  0x4f   :  { %v3088_v3 = vld [vmem:[#allocation5 + $0x700] sm:$0xf]  ;;  %v3440_v4 = vld [vmem:[#allocation5 + $0x70c] sm:$0xf0]  ;;  %v2961_v16 = vor.u32 %v3408_v2, %v2960_v0  ;;  %1683 = vmatpush.bf16.msrb.mxu0 %v2705_v11  ;;  %v3266_v45 = vld [vmem:[#allocation5 + $0x1a4] sm:$0xf]  ;;  %v2277_v52 = vor.u32 %v3234_v43, %v2274_v44 }
  0x50   :  { %v68_v19 = vld [vmem:[#allocation2 + $0x30] sm:$0xff]  ;;  %v3089_v20 = vor.u32 %v3440_v4, %v3088_v3  ;;  %v66_v22 = vld [vmem:[#allocation2 + $0x20] sm:$0xff]  ;;  %1696 = vmatpush.bf16.msrb.mxu1 %v2833_v15 }
  0x51   :  { %v3691_v31 = vpack.c.bf16 %v68_v19, %v68_v19  ;;  %1709 = vmatpush.bf16.msrb.mxu2 %v2961_v16  ;;  %v3693_v35 = vpack.c.bf16 %v66_v22, %v66_v22  ;;  %v2402_v47 = vld [vmem:[#allocation5 + $0x1b0] sm:$0xf0]  ;;  %v3298_v48 = vld [vmem:[#allocation5 + $0x2a4] sm:$0xf] }
  0x52   :  { %1722 = vmatpush.bf16.msrb.mxu3 %v3089_v20  ;;  %v2530_v49 = vld [vmem:[#allocation5 + $0x2b0] sm:$0xf0]  ;;  %v3330_v50 = vld [vmem:[#allocation5 + $0x3a4] sm:$0xf]  ;;  %v2405_v53 = vor.u32 %v3266_v45, %v2402_v47 }
  0x53   :  { %1728 = vmatpush.bf16.msra.mxu0 %v2309_v21  ;;  %v2658_v51 = vld [vmem:[#allocation5 + $0x3b0] sm:$0xf0]  ;;  %1697 = vmatmul.bf16.vlgmr.msrb.gmra.mxu1 %v3697_v40  ;;  %v2533_v54 = vor.u32 %v3298_v48, %v2530_v49  ;;  %v3230_v55 = vld [vmem:[#allocation5 + $0x84] sm:$0xf] }
  0x54   :  { %1741 = vmatpush.bf16.msra.mxu1 %v2437_v25  ;;  %1710 = vmatmul.bf16.vlgmr.msrb.gmra.mxu2 %v3691_v31  ;;  %v2258_v56 = vld [vmem:[#allocation5 + $0x90] sm:$0xf0]  ;;  %v3262_v58 = vld [vmem:[#allocation5 + $0x184] sm:$0xf]  ;;  %v2661_v59 = vor.u32 %v3330_v50, %v2658_v51 }
  0x55   :  { %1754 = vmatpush.bf16.msra.mxu2 %v2565_v26  ;;  %1684 = vmatmul.bf16.vlgmr.msrb.gmra.mxu0 %v3693_v35  ;;  %v2386_v60 = vld [vmem:[#allocation5 + $0x190] sm:$0xf0]  ;;  %v3294_v61 = vld [vmem:[#allocation5 + $0x284] sm:$0xf]  ;;  %v2261_v1 = vor.u32 %v3230_v55, %v2258_v56 }
  0x56   :  { %1767 = vmatpush.bf16.msra.mxu3 %v2693_v30  ;;  %v2514_v62 = vld [vmem:[#allocation5 + $0x290] sm:$0xf0]  ;;  %v3326_v63 = vld [vmem:[#allocation5 + $0x384] sm:$0xf]  ;;  %v2389_v2 = vor.u32 %v3262_v58, %v2386_v60 }
  0x57   :  { %1723 = vmatmul.bf16.vlgmr.msrb.gmra.mxu3 %v3695_v36  ;;  %1729 = vmatpush.bf16.msra.mxu0 %v2293_v39  ;;  %v2642_v0 = vld [vmem:[#allocation5 + $0x390] sm:$0xf0]  ;;  %v2517_v3 = vor.u32 %v3294_v61, %v2514_v62  ;;  %v3226_v4 = vld [vmem:[#allocation5 + $0x64] sm:$0xf] }
  0x58   :  { %1742 = vmatpush.bf16.msra.mxu1 %v2421_v41  ;;  %v2242_v8 = vld [vmem:[#allocation5 + $0x70] sm:$0xf0]  ;;  %v3258_v9 = vld [vmem:[#allocation5 + $0x164] sm:$0xf]  ;;  %v2645_v10 = vor.u32 %v3326_v63, %v2642_v0 }
  0x59   :  { %1755 = vmatpush.bf16.msra.mxu2 %v2549_v42  ;;  %v2370_v11 = vld [vmem:[#allocation5 + $0x170] sm:$0xf0]  ;;  %v3290_v12 = vld [vmem:[#allocation5 + $0x264] sm:$0xf]  ;;  %v2245_v16 = vor.u32 %v3226_v4, %v2242_v8 }
  0x5a   :  { %1768 = vmatpush.bf16.msra.mxu3 %v2677_v46  ;;  %v2498_v13 = vld [vmem:[#allocation5 + $0x270] sm:$0xf0]  ;;  %v3322_v14 = vld [vmem:[#allocation5 + $0x364] sm:$0xf]  ;;  %v2373_v17 = vor.u32 %v3258_v9, %v2370_v11 }
  0x5b   :  { %1730 = vmatpush.bf16.msra.mxu0 %v2277_v52  ;;  %v2626_v15 = vld [vmem:[#allocation5 + $0x370] sm:$0xf0]  ;;  %v2501_v18 = vor.u32 %v3290_v12, %v2498_v13  ;;  %v3222_v19 = vld [vmem:[#allocation5 + $0x44] sm:$0xf] }
  0x5c   :  { %1743 = vmatpush.bf16.msra.mxu1 %v2405_v53  ;;  %v2226_v20 = vld [vmem:[#allocation5 + $0x50] sm:$0xf0]  ;;  %v3254_v21 = vld [vmem:[#allocation5 + $0x144] sm:$0xf]  ;;  %v2629_v22 = vor.u32 %v3322_v14, %v2626_v15 }
  0x5d   :  { %1756 = vmatpush.bf16.msra.mxu2 %v2533_v54  ;;  %v2354_v23 = vld [vmem:[#allocation5 + $0x150] sm:$0xf0]  ;;  %v3286_v24 = vld [vmem:[#allocation5 + $0x244] sm:$0xf]  ;;  %v2229_v28 = vor.u32 %v3222_v19, %v2226_v20 }
  0x5e   :  { %1769 = vmatpush.bf16.msra.mxu3 %v2661_v59  ;;  %v2482_v25 = vld [vmem:[#allocation5 + $0x250] sm:$0xf0]  ;;  %v3318_v26 = vld [vmem:[#allocation5 + $0x344] sm:$0xf]  ;;  %v2357_v29 = vor.u32 %v3254_v21, %v2354_v23 }
  0x5f   :  { %1731 = vmatpush.bf16.msra.mxu0 %v2261_v1  ;;  %v2610_v27 = vld [vmem:[#allocation5 + $0x350] sm:$0xf0]  ;;  %v2485_v30 = vor.u32 %v3286_v24, %v2482_v25  ;;  %v3218_v32 = vld [vmem:[#allocation5 + $0x24] sm:$0xf] }
  0x60   :  { %1744 = vmatpush.bf16.msra.mxu1 %v2389_v2  ;;  %v2210_v33 = vld [vmem:[#allocation5 + $0x30] sm:$0xf0]  ;;  %v3250_v34 = vld [vmem:[#allocation5 + $0x124] sm:$0xf]  ;;  %v2613_v37 = vor.u32 %v3318_v26, %v2610_v27 }
  0x61   :  { %1757 = vmatpush.bf16.msra.mxu2 %v2517_v3  ;;  %v2338_v38 = vld [vmem:[#allocation5 + $0x130] sm:$0xf0]  ;;  %v3282_v39 = vld [vmem:[#allocation5 + $0x224] sm:$0xf]  ;;  %v2213_v44 = vor.u32 %v3218_v32, %v2210_v33 }
  0x62   :  { %1770 = vmatpush.bf16.msra.mxu3 %v2645_v10  ;;  %v2466_v41 = vld [vmem:[#allocation5 + $0x230] sm:$0xf0]  ;;  %v3314_v42 = vld [vmem:[#allocation5 + $0x324] sm:$0xf]  ;;  %v2341_v47 = vor.u32 %v3250_v34, %v2338_v38 }
  0x63   :  { %1732 = vmatpush.bf16.msra.mxu0 %v2245_v16  ;;  %v2594_v43 = vld [vmem:[#allocation5 + $0x330] sm:$0xf0]  ;;  %v3214_v45 = vld [vmem:[#allocation5 + $0x4] sm:$0xf]  ;;  %v2469_v48 = vor.u32 %v3282_v39, %v2466_v41 }
  0x64   :  { %1745 = vmatpush.bf16.msra.mxu1 %v2373_v17  ;;  %v2194_v46 = vld [vmem:[#allocation5 + $0x10] sm:$0xf0]  ;;  %v3246_v49 = vld [vmem:[#allocation5 + $0x104] sm:$0xf]  ;;  %v2597_v52 = vor.u32 %v3314_v42, %v2594_v43 }
  0x65   :  { %1758 = vmatpush.bf16.msra.mxu2 %v2501_v18  ;;  %v2322_v50 = vld [vmem:[#allocation5 + $0x110] sm:$0xf0]  ;;  %v3278_v51 = vld [vmem:[#allocation5 + $0x204] sm:$0xf]  ;;  %v2197_v60 = vor.u32 %v3214_v45, %v2194_v46 }
  0x66   :  { %1771 = vmatpush.bf16.msra.mxu3 %v2629_v22  ;;  %v2450_v53 = vld [vmem:[#allocation5 + $0x210] sm:$0xf0]  ;;  %v3310_v54 = vld [vmem:[#allocation5 + $0x304] sm:$0xf]  ;;  %v2325_v0 = vor.u32 %v3246_v49, %v2322_v50 }
  0x67   :  { %1733 = vmatpush.bf16.msra.mxu0 %v2229_v28  ;;  %v2578_v55 = vld [vmem:[#allocation5 + $0x310] sm:$0xf0]  ;;  %v3370_v56 = vld [vmem:[#allocation5 + $0x4e4] sm:$0xf]  ;;  %v2453_v1 = vor.u32 %v3278_v51, %v2450_v53 }
  0x68   :  { %1746 = vmatpush.bf16.msra.mxu1 %v2357_v29  ;;  %v2818_v58 = vld [vmem:[#allocation5 + $0x4f0] sm:$0xf0]  ;;  %v3402_v59 = vld [vmem:[#allocation5 + $0x5e4] sm:$0xf]  ;;  %v2581_v4 = vor.u32 %v3310_v54, %v2578_v55 }
  0x69   :  { %1759 = vmatpush.bf16.msra.mxu2 %v2485_v30  ;;  %v2946_v61 = vld [vmem:[#allocation5 + $0x5f0] sm:$0xf0]  ;;  %v3434_v62 = vld [vmem:[#allocation5 + $0x6e4] sm:$0xf]  ;;  %v2821_v8 = vor.u32 %v3370_v56, %v2818_v58 }
  0x6a   :  { %1772 = vmatpush.bf16.msra.mxu3 %v2613_v37  ;;  %v3074_v63 = vld [vmem:[#allocation5 + $0x6f0] sm:$0xf0]  ;;  %v3466_v2 = vld [vmem:[#allocation5 + $0x7e4] sm:$0xf]  ;;  %v2949_v9 = vor.u32 %v3402_v59, %v2946_v61 }
  0x6b   :  { %1734 = vmatpush.bf16.msra.mxu0 %v2213_v44  ;;  %v3202_v3 = vld [vmem:[#allocation5 + $0x7f0] sm:$0xf0]  ;;  %v3077_v10 = vor.u32 %v3434_v62, %v3074_v63  ;;  %v3366_v11 = vld [vmem:[#allocation5 + $0x4c4] sm:$0xf] }
  0x6c   :  { %1747 = vmatpush.bf16.msra.mxu1 %v2341_v47  ;;  %v2802_v12 = vld [vmem:[#allocation5 + $0x4d0] sm:$0xf0]  ;;  %v3398_v13 = vld [vmem:[#allocation5 + $0x5c4] sm:$0xf]  ;;  %v3205_v14 = vor.u32 %v3466_v2, %v3202_v3 }
  0x6d   :  { %1760 = vmatpush.bf16.msra.mxu2 %v2469_v48  ;;  %v2930_v15 = vld [vmem:[#allocation5 + $0x5d0] sm:$0xf0]  ;;  %v3430_v16 = vld [vmem:[#allocation5 + $0x6c4] sm:$0xf]  ;;  %v2805_v20 = vor.u32 %v3366_v11, %v2802_v12 }
  0x6e   :  { %1773 = vmatpush.bf16.msra.mxu3 %v2597_v52  ;;  %v3058_v17 = vld [vmem:[#allocation5 + $0x6d0] sm:$0xf0]  ;;  %v3462_v18 = vld [vmem:[#allocation5 + $0x7c4] sm:$0xf]  ;;  %v2933_v21 = vor.u32 %v3398_v13, %v2930_v15 }
  0x6f   :  { %1735 = vmatpush.bf16.msra.mxu0 %v2197_v60  ;;  %v3186_v19 = vld [vmem:[#allocation5 + $0x7d0] sm:$0xf0]  ;;  %v3061_v22 = vor.u32 %v3430_v16, %v3058_v17  ;;  %v3362_v23 = vld [vmem:[#allocation5 + $0x4a4] sm:$0xf] }
  0x70   :  { %1748 = vmatpush.bf16.msra.mxu1 %v2325_v0  ;;  %v2786_v24 = vld [vmem:[#allocation5 + $0x4b0] sm:$0xf0]  ;;  %v3394_v25 = vld [vmem:[#allocation5 + $0x5a4] sm:$0xf]  ;;  %v3189_v26 = vor.u32 %v3462_v18, %v3186_v19 }
  0x71   :  { %1761 = vmatpush.bf16.msra.mxu2 %v2453_v1  ;;  %v2914_v27 = vld [vmem:[#allocation5 + $0x5b0] sm:$0xf0]  ;;  %v3426_v28 = vld [vmem:[#allocation5 + $0x6a4] sm:$0xf]  ;;  %v2789_v33 = vor.u32 %v3362_v23, %v2786_v24 }
  0x72   :  { %1774 = vmatpush.bf16.msra.mxu3 %v2581_v4  ;;  %v3042_v29 = vld [vmem:[#allocation5 + $0x6b0] sm:$0xf0]  ;;  %v3458_v30 = vld [vmem:[#allocation5 + $0x7a4] sm:$0xf]  ;;  %1736 = vmatmul.bf16.vlgmr.msra.gmra.mxu0 %v3682_v5  ;;  %v2917_v34 = vor.u32 %v3394_v25, %v2914_v27 }
  0x73   :  { %1780 = vmatpush.bf16.msrb.mxu0 %v2821_v8  ;;  %v3170_v32 = vld [vmem:[#allocation5 + $0x7b0] sm:$0xf0]  ;;  %1749 = vmatmul.bf16.vlgmr.msra.gmra.mxu1 %v3686_v7  ;;  %v3045_v37 = vor.u32 %v3426_v28, %v3042_v29  ;;  %v3358_v38 = vld [vmem:[#allocation5 + $0x484] sm:$0xf] }
  0x74   :  { %1793 = vmatpush.bf16.msrb.mxu1 %v2949_v9  ;;  %1762 = vmatmul.bf16.vlgmr.msra.gmra.mxu2 %v3679_v57  ;;  %v2770_v39 = vld [vmem:[#allocation5 + $0x490] sm:$0xf0]  ;;  %v3390_v41 = vld [vmem:[#allocation5 + $0x584] sm:$0xf]  ;;  %v3173_v42 = vor.u32 %v3458_v30, %v3170_v32 }
  0x75   :  { %1806 = vmatpush.bf16.msrb.mxu2 %v3077_v10  ;;  %1775 = vmatmul.bf16.vlgmr.msra.gmra.mxu3 %v3684_v6  ;;  %v2898_v43 = vld [vmem:[#allocation5 + $0x590] sm:$0xf0]  ;;  %v3422_v44 = vld [vmem:[#allocation5 + $0x684] sm:$0xf]  ;;  %v2773_v48 = vor.u32 %v3358_v38, %v2770_v39  ;;  %v2312_v39 = vld [vmem:[#allocation5 + $0xe8] sm:$0xf] }
  0x76   :  { %1819 = vmatpush.bf16.msrb.mxu3 %v3205_v14  ;;  %v3026_v45 = vld [vmem:[#allocation5 + $0x690] sm:$0xf0]  ;;  %v3454_v46 = vld [vmem:[#allocation5 + $0x784] sm:$0xf]  ;;  %v2901_v49 = vor.u32 %v3390_v41, %v2898_v43  ;;  %v3245_v41 = vld [vmem:[#allocation5 + $0xf4] sm:$0xf0] }
  0x77   :  { %1781 = vmatpush.bf16.msrb.mxu0 %v2805_v20  ;;  %v3154_v47 = vld [vmem:[#allocation5 + $0x790] sm:$0xf0]  ;;  %v3029_v50 = vor.u32 %v3422_v44, %v3026_v45  ;;  %v3354_v51 = vld [vmem:[#allocation5 + $0x464] sm:$0xf]  ;;  %v3277_v44 = vld [vmem:[#allocation5 + $0x1f4] sm:$0xf0] }
  0x78   :  { %1794 = vmatpush.bf16.msrb.mxu1 %v2933_v21  ;;  %v2754_v52 = vld [vmem:[#allocation5 + $0x470] sm:$0xf0]  ;;  %v3386_v53 = vld [vmem:[#allocation5 + $0x564] sm:$0xf]  ;;  %v3157_v54 = vor.u32 %v3454_v46, %v3154_v47  ;;  %v2568_v45 = vld [vmem:[#allocation5 + $0x2e8] sm:$0xf] }
  0x79   :  { %1807 = vmatpush.bf16.msrb.mxu2 %v3061_v22  ;;  %v2882_v55 = vld [vmem:[#allocation5 + $0x570] sm:$0xf0]  ;;  %v3418_v56 = vld [vmem:[#allocation5 + $0x664] sm:$0xf]  ;;  %v2757_v61 = vor.u32 %v3354_v51, %v2754_v52  ;;  %v3309_v46 = vld [vmem:[#allocation5 + $0x2f4] sm:$0xf0]  ;;  %v2313_v52 = vor.u32 %v3245_v41, %v2312_v39 }
  0x7a   :  { %1820 = vmatpush.bf16.msrb.mxu3 %v3189_v26  ;;  %v3010_v58 = vld [vmem:[#allocation5 + $0x670] sm:$0xf0]  ;;  %v3450_v59 = vld [vmem:[#allocation5 + $0x764] sm:$0xf]  ;;  %v2885_v62 = vor.u32 %v3386_v53, %v2882_v55  ;;  %v2296_v55 = vld [vmem:[#allocation5 + $0xc8] sm:$0xf] }
  0x7b   :  { %1782 = vmatpush.bf16.msrb.mxu0 %v2789_v33  ;;  %v3138_v60 = vld [vmem:[#allocation5 + $0x770] sm:$0xf0]  ;;  %v3013_v63 = vor.u32 %v3418_v56, %v3010_v58  ;;  %v3350_v0 = vld [vmem:[#allocation5 + $0x444] sm:$0xf]  ;;  %v3241_v56 = vld [vmem:[#allocation5 + $0xd4] sm:$0xf0] }
  0x7c   :  { %1795 = vmatpush.bf16.msrb.mxu1 %v2917_v34  ;;  %v2738_v1 = vld [vmem:[#allocation5 + $0x450] sm:$0xf0]  ;;  %v3382_v2 = vld [vmem:[#allocation5 + $0x544] sm:$0xf]  ;;  %v3141_v3 = vor.u32 %v3450_v59, %v3138_v60  ;;  %v2424_v58 = vld [vmem:[#allocation5 + $0x1c8] sm:$0xf] }
  0x7d   :  { %1808 = vmatpush.bf16.msrb.mxu2 %v3045_v37  ;;  %v2866_v4 = vld [vmem:[#allocation5 + $0x550] sm:$0xf0]  ;;  %v3414_v8 = vld [vmem:[#allocation5 + $0x644] sm:$0xf]  ;;  %v2741_v12 = vor.u32 %v3350_v0, %v2738_v1  ;;  %v3273_v60 = vld [vmem:[#allocation5 + $0x1d4] sm:$0xf0]  ;;  %v2297_v1 = vor.u32 %v3241_v56, %v2296_v55 }
  0x7e   :  { %1821 = vmatpush.bf16.msrb.mxu3 %v3173_v42  ;;  %v2994_v9 = vld [vmem:[#allocation5 + $0x650] sm:$0xf0]  ;;  %v3446_v10 = vld [vmem:[#allocation5 + $0x744] sm:$0xf]  ;;  %v2869_v13 = vor.u32 %v3382_v2, %v2866_v4  ;;  %v2440_v42 = vld [vmem:[#allocation5 + $0x1e8] sm:$0xf]  ;;  %v2425_v2 = vor.u32 %v3273_v60, %v2424_v58 }
  0x7f   :  { %1783 = vmatpush.bf16.msrb.mxu0 %v2773_v48  ;;  %v3122_v11 = vld [vmem:[#allocation5 + $0x750] sm:$0xf0]  ;;  %v2997_v14 = vor.u32 %v3414_v8, %v2994_v9  ;;  %v3346_v15 = vld [vmem:[#allocation5 + $0x424] sm:$0xf]  ;;  %v2441_v53 = vor.u32 %v3277_v44, %v2440_v42  ;;  %v3337_v0 = vld [vmem:[#allocation5 + $0x3d4] sm:$0xf0] }
  0x80   :  { %1796 = vmatpush.bf16.msrb.mxu1 %v2901_v49  ;;  %v2722_v16 = vld [vmem:[#allocation5 + $0x430] sm:$0xf0]  ;;  %v3378_v17 = vld [vmem:[#allocation5 + $0x524] sm:$0xf]  ;;  %v3125_v18 = vor.u32 %v3446_v10, %v3122_v11  ;;  %v2696_v49 = vld [vmem:[#allocation5 + $0x3e8] sm:$0xf] }
  0x81   :  { %1809 = vmatpush.bf16.msrb.mxu2 %v3029_v50  ;;  %v2850_v19 = vld [vmem:[#allocation5 + $0x530] sm:$0xf0]  ;;  %v3410_v20 = vld [vmem:[#allocation5 + $0x624] sm:$0xf]  ;;  %v2725_v24 = vor.u32 %v3346_v15, %v2722_v16  ;;  %v3341_v50 = vld [vmem:[#allocation5 + $0x3f4] sm:$0xf0] }
  0x82   :  { %1822 = vmatpush.bf16.msrb.mxu3 %v3157_v54  ;;  %v2978_v21 = vld [vmem:[#allocation5 + $0x630] sm:$0xf0]  ;;  %v3442_v22 = vld [vmem:[#allocation5 + $0x724] sm:$0xf]  ;;  %v2853_v27 = vor.u32 %v3378_v17, %v2850_v19  ;;  %v2569_v54 = vor.u32 %v3309_v46, %v2568_v45  ;;  %v2697_v59 = vor.u32 %v3341_v50, %v2696_v49  ;;  %v2280_v4 = vld [vmem:[#allocation5 + $0xa8] sm:$0xf] }
  0x83   :  { %1784 = vmatpush.bf16.msrb.mxu0 %v2757_v61  ;;  %v3106_v23 = vld [vmem:[#allocation5 + $0x730] sm:$0xf0]  ;;  %v3342_v25 = vld [vmem:[#allocation5 + $0x404] sm:$0xf]  ;;  %v2981_v28 = vor.u32 %v3410_v20, %v2978_v21  ;;  %v2552_v61 = vld [vmem:[#allocation5 + $0x2c8] sm:$0xf] }
  0x84   :  { %1797 = vmatpush.bf16.msrb.mxu1 %v2885_v62  ;;  %v2706_v26 = vld [vmem:[#allocation5 + $0x410] sm:$0xf0]  ;;  %v3374_v29 = vld [vmem:[#allocation5 + $0x504] sm:$0xf]  ;;  %v3109_v33 = vor.u32 %v3442_v22, %v3106_v23  ;;  %v3305_v62 = vld [vmem:[#allocation5 + $0x2d4] sm:$0xf0] }
  0x85   :  { %1810 = vmatpush.bf16.msrb.mxu2 %v3013_v63  ;;  %v2834_v30 = vld [vmem:[#allocation5 + $0x510] sm:$0xf0]  ;;  %v3406_v32 = vld [vmem:[#allocation5 + $0x604] sm:$0xf]  ;;  %v2709_v43 = vor.u32 %v3342_v25, %v2706_v26  ;;  %v2680_v63 = vld [vmem:[#allocation5 + $0x3c8] sm:$0xf] }
  0x86   :  { %1823 = vmatpush.bf16.msrb.mxu3 %v3141_v3  ;;  %v2962_v34 = vld [vmem:[#allocation5 + $0x610] sm:$0xf0]  ;;  %v3438_v37 = vld [vmem:[#allocation5 + $0x704] sm:$0xf]  ;;  %v2837_v47 = vor.u32 %v3374_v29, %v2834_v30  ;;  %v2553_v3 = vor.u32 %v3305_v62, %v2552_v61  ;;  %v3237_v8 = vld [vmem:[#allocation5 + $0xb4] sm:$0xf0]  ;;  %v2681_v10 = vor.u32 %v3337_v0, %v2680_v63 }
  0x87   :  { %1785 = vmatpush.bf16.msrb.mxu0 %v2741_v12  ;;  %v3090_v38 = vld [vmem:[#allocation5 + $0x710] sm:$0xf0]  ;;  %v2965_v48 = vor.u32 %v3406_v32, %v2962_v34  ;;  %v2408_v9 = vld [vmem:[#allocation5 + $0x1a8] sm:$0xf]  ;;  %v3269_v11 = vld [vmem:[#allocation5 + $0x1b4] sm:$0xf0]  ;;  %v2281_v16 = vor.u32 %v3237_v8, %v2280_v4 }
  0x88   :  { %1798 = vmatpush.bf16.msrb.mxu1 %v2869_v13  ;;  %v3093_v51 = vor.u32 %v3438_v37, %v3090_v38  ;;  %v2536_v12 = vld [vmem:[#allocation5 + $0x2a8] sm:$0xf]  ;;  %v3301_v13 = vld [vmem:[#allocation5 + $0x2b4] sm:$0xf0]  ;;  %v2409_v17 = vor.u32 %v3269_v11, %v2408_v9 }
  0x89   :  { %1811 = vmatpush.bf16.msrb.mxu2 %v2997_v14  ;;  %v2664_v14 = vld [vmem:[#allocation5 + $0x3a8] sm:$0xf]  ;;  %v3333_v15 = vld [vmem:[#allocation5 + $0x3b4] sm:$0xf0] }
  0x8a   :  { %1824 = vmatpush.bf16.msrb.mxu3 %v3125_v18  ;;  %v2537_v18 = vor.u32 %v3301_v13, %v2536_v12  ;;  %v2264_v19 = vld [vmem:[#allocation5 + $0x88] sm:$0xf]  ;;  %v3233_v20 = vld [vmem:[#allocation5 + $0x94] sm:$0xf0]  ;;  %v2665_v22 = vor.u32 %v3333_v15, %v2664_v14 }
  0x8b   :  { %1786 = vmatpush.bf16.msrb.mxu0 %v2725_v24  ;;  %v2392_v21 = vld [vmem:[#allocation5 + $0x188] sm:$0xf]  ;;  %v3265_v23 = vld [vmem:[#allocation5 + $0x194] sm:$0xf0] }
  0x8c   :  { %1799 = vmatpush.bf16.msrb.mxu1 %v2853_v27  ;;  %v2520_v24 = vld [vmem:[#allocation5 + $0x288] sm:$0xf]  ;;  %v3297_v25 = vld [vmem:[#allocation5 + $0x294] sm:$0xf0]  ;;  %v2393_v29 = vor.u32 %v3265_v23, %v2392_v21 }
  0x8d   :  { %1812 = vmatpush.bf16.msrb.mxu2 %v2981_v28  ;;  %v2648_v26 = vld [vmem:[#allocation5 + $0x388] sm:$0xf]  ;;  %v3329_v27 = vld [vmem:[#allocation5 + $0x394] sm:$0xf0]  ;;  %v2265_v28 = vor.u32 %v3233_v20, %v2264_v19  ;;  %v2521_v30 = vor.u32 %v3297_v25, %v2520_v24 }
  0x8e   :  { %1825 = vmatpush.bf16.msrb.mxu3 %v3109_v33  ;;  %v2248_v32 = vld [vmem:[#allocation5 + $0x68] sm:$0xf]  ;;  %v3229_v33 = vld [vmem:[#allocation5 + $0x74] sm:$0xf0]  ;;  %v2649_v37 = vor.u32 %v3329_v27, %v2648_v26 }
  0x8f   :  { %1787 = vmatpush.bf16.msrb.mxu0 %v2709_v43  ;;  %v2376_v34 = vld [vmem:[#allocation5 + $0x168] sm:$0xf]  ;;  %v3261_v38 = vld [vmem:[#allocation5 + $0x174] sm:$0xf0]  ;;  %v2249_v44 = vor.u32 %v3229_v33, %v2248_v32 }
  0x90   :  { %1800 = vmatpush.bf16.msrb.mxu1 %v2837_v47  ;;  %v2504_v39 = vld [vmem:[#allocation5 + $0x268] sm:$0xf]  ;;  %v3293_v41 = vld [vmem:[#allocation5 + $0x274] sm:$0xf0]  ;;  %v2377_v45 = vor.u32 %v3261_v38, %v2376_v34 }
  0x91   :  { %1813 = vmatpush.bf16.msrb.mxu2 %v2965_v48  ;;  %v2632_v42 = vld [vmem:[#allocation5 + $0x368] sm:$0xf]  ;;  %v3325_v43 = vld [vmem:[#allocation5 + $0x374] sm:$0xf0]  ;;  %v2505_v46 = vor.u32 %v3293_v41, %v2504_v39 }
  0x92   :  { %1826 = vmatpush.bf16.msrb.mxu3 %v3093_v51  ;;  %1788 = vmatmul.bf16.vlgmr.msrb.gmra.mxu0 %v3693_v35  ;;  %v2232_v47 = vld [vmem:[#allocation5 + $0x48] sm:$0xf]  ;;  %v3225_v48 = vld [vmem:[#allocation5 + $0x54] sm:$0xf0]  ;;  %v2633_v50 = vor.u32 %v3325_v43, %v2632_v42 }
  0x93   :  { %1832 = vmatpush.bf16.msra.mxu0 %v2313_v52  ;;  %1801 = vmatmul.bf16.vlgmr.msrb.gmra.mxu1 %v3697_v40  ;;  %v2360_v49 = vld [vmem:[#allocation5 + $0x148] sm:$0xf]  ;;  %v3257_v51 = vld [vmem:[#allocation5 + $0x154] sm:$0xf0]  ;;  %v2233_v56 = vor.u32 %v3225_v48, %v2232_v47 }
  0x94   :  { %1845 = vmatpush.bf16.msra.mxu1 %v2441_v53  ;;  %1814 = vmatmul.bf16.vlgmr.msrb.gmra.mxu2 %v3691_v31  ;;  %v2488_v52 = vld [vmem:[#allocation5 + $0x248] sm:$0xf]  ;;  %v3289_v53 = vld [vmem:[#allocation5 + $0x254] sm:$0xf0]  ;;  %v2361_v58 = vor.u32 %v3257_v51, %v2360_v49 }
  0x95   :  { %1858 = vmatpush.bf16.msra.mxu2 %v2569_v54  ;;  %1827 = vmatmul.bf16.vlgmr.msrb.gmra.mxu3 %v3695_v36  ;;  %v2616_v54 = vld [vmem:[#allocation5 + $0x348] sm:$0xf]  ;;  %v3321_v55 = vld [vmem:[#allocation5 + $0x354] sm:$0xf0] }
  0x96   :  { %1871 = vmatpush.bf16.msra.mxu3 %v2697_v59  ;;  %v2489_v59 = vor.u32 %v3289_v53, %v2488_v52  ;;  %v2216_v60 = vld [vmem:[#allocation5 + $0x28] sm:$0xf]  ;;  %v3221_v61 = vld [vmem:[#allocation5 + $0x34] sm:$0xf0]  ;;  %v2617_v63 = vor.u32 %v3321_v55, %v2616_v54 }
  0x97   :  { %1833 = vmatpush.bf16.msra.mxu0 %v2297_v1  ;;  %v2344_v62 = vld [vmem:[#allocation5 + $0x128] sm:$0xf]  ;;  %v3253_v0 = vld [vmem:[#allocation5 + $0x134] sm:$0xf0]  ;;  %v2217_v8 = vor.u32 %v3221_v61, %v2216_v60 }
  0x98   :  { %1846 = vmatpush.bf16.msra.mxu1 %v2425_v2  ;;  %v2472_v1 = vld [vmem:[#allocation5 + $0x228] sm:$0xf]  ;;  %v3285_v2 = vld [vmem:[#allocation5 + $0x234] sm:$0xf0]  ;;  %v2345_v11 = vor.u32 %v3253_v0, %v2344_v62 }
  0x99   :  { %1859 = vmatpush.bf16.msra.mxu2 %v2553_v3  ;;  %v2600_v3 = vld [vmem:[#allocation5 + $0x328] sm:$0xf]  ;;  %v3317_v4 = vld [vmem:[#allocation5 + $0x334] sm:$0xf0]  ;;  %v2473_v12 = vor.u32 %v3285_v2, %v2472_v1 }
  0x9a   :  { %1872 = vmatpush.bf16.msra.mxu3 %v2681_v10  ;;  %v2200_v9 = vld [vmem:[#allocation5 + $0x8] sm:$0xf]  ;;  %v3217_v10 = vld [vmem:[#allocation5 + $0x14] sm:$0xf0] }
  0x9b   :  { %1834 = vmatpush.bf16.msra.mxu0 %v2281_v16  ;;  %v2328_v13 = vld [vmem:[#allocation5 + $0x108] sm:$0xf]  ;;  %v3249_v14 = vld [vmem:[#allocation5 + $0x114] sm:$0xf0]  ;;  %v2601_v16 = vor.u32 %v3317_v4, %v2600_v3  ;;  %v2201_v23 = vor.u32 %v3217_v10, %v2200_v9 }
  0x9c   :  { %1847 = vmatpush.bf16.msra.mxu1 %v2409_v17  ;;  %v2456_v15 = vld [vmem:[#allocation5 + $0x208] sm:$0xf]  ;;  %v3281_v17 = vld [vmem:[#allocation5 + $0x214] sm:$0xf0]  ;;  %v2329_v27 = vor.u32 %v3249_v14, %v2328_v13 }
  0x9d   :  { %1860 = vmatpush.bf16.msra.mxu2 %v2537_v18  ;;  %v2584_v18 = vld [vmem:[#allocation5 + $0x308] sm:$0xf]  ;;  %v3313_v19 = vld [vmem:[#allocation5 + $0x314] sm:$0xf0] }
  0x9e   :  { %1873 = vmatpush.bf16.msra.mxu3 %v2665_v22  ;;  %v2824_v20 = vld [vmem:[#allocation5 + $0x4e8] sm:$0xf]  ;;  %v3373_v21 = vld [vmem:[#allocation5 + $0x4f4] sm:$0xf0]  ;;  %v2585_v32 = vor.u32 %v3313_v19, %v2584_v18 }
  0x9f   :  { %1835 = vmatpush.bf16.msra.mxu0 %v2265_v28  ;;  %v2952_v22 = vld [vmem:[#allocation5 + $0x5e8] sm:$0xf]  ;;  %v3405_v24 = vld [vmem:[#allocation5 + $0x5f4] sm:$0xf0]  ;;  %v2457_v28 = vor.u32 %v3281_v17, %v2456_v15  ;;  %v2825_v33 = vor.u32 %v3373_v21, %v2824_v20 }
  0xa0   :  { %1848 = vmatpush.bf16.msra.mxu1 %v2393_v29  ;;  %v3080_v25 = vld [vmem:[#allocation5 + $0x6e8] sm:$0xf]  ;;  %v3437_v26 = vld [vmem:[#allocation5 + $0x6f4] sm:$0xf0]  ;;  %v2953_v34 = vor.u32 %v3405_v24, %v2952_v22 }
  0xa1   :  { %1861 = vmatpush.bf16.msra.mxu2 %v2521_v30  ;;  %v3208_v29 = vld [vmem:[#allocation5 + $0x7e8] sm:$0xf]  ;;  %v3469_v30 = vld [vmem:[#allocation5 + $0x7f4] sm:$0xf0] }
  0xa2   :  { %1874 = vmatpush.bf16.msra.mxu3 %v2649_v37  ;;  %v3081_v37 = vor.u32 %v3437_v26, %v3080_v25  ;;  %v2808_v38 = vld [vmem:[#allocation5 + $0x4c8] sm:$0xf]  ;;  %v3369_v39 = vld [vmem:[#allocation5 + $0x4d4] sm:$0xf0]  ;;  %v3209_v42 = vor.u32 %v3469_v30, %v3208_v29 }
  0xa3   :  { %1836 = vmatpush.bf16.msra.mxu0 %v2249_v44  ;;  %v2936_v41 = vld [vmem:[#allocation5 + $0x5c8] sm:$0xf]  ;;  %v3401_v43 = vld [vmem:[#allocation5 + $0x5d4] sm:$0xf0]  ;;  %v2809_v48 = vor.u32 %v3369_v39, %v2808_v38 }
  0xa4   :  { %1849 = vmatpush.bf16.msra.mxu1 %v2377_v45  ;;  %v3064_v44 = vld [vmem:[#allocation5 + $0x6c8] sm:$0xf]  ;;  %v3433_v45 = vld [vmem:[#allocation5 + $0x6d4] sm:$0xf0]  ;;  %v2937_v49 = vor.u32 %v3401_v43, %v2936_v41 }
  0xa5   :  { %1862 = vmatpush.bf16.msra.mxu2 %v2505_v46  ;;  %v3192_v46 = vld [vmem:[#allocation5 + $0x7c8] sm:$0xf]  ;;  %v3465_v47 = vld [vmem:[#allocation5 + $0x7d4] sm:$0xf0] }
  0xa6   :  { %1875 = vmatpush.bf16.msra.mxu3 %v2633_v50  ;;  %v3065_v50 = vor.u32 %v3433_v45, %v3064_v44  ;;  %v2792_v51 = vld [vmem:[#allocation5 + $0x4a8] sm:$0xf]  ;;  %v3365_v52 = vld [vmem:[#allocation5 + $0x4b4] sm:$0xf0]  ;;  %v3193_v54 = vor.u32 %v3465_v47, %v3192_v46  ;;  %v3719_v44 = vld [vmem:[#allocation7] sm:$0xf] }
  0xa7   :  { %1837 = vmatpush.bf16.msra.mxu0 %v2233_v56  ;;  %v2920_v53 = vld [vmem:[#allocation5 + $0x5a8] sm:$0xf]  ;;  %v3397_v55 = vld [vmem:[#allocation5 + $0x5b4] sm:$0xf0]  ;;  %v2793_v61 = vor.u32 %v3365_v52, %v2792_v51 }
  0xa8   :  { %1850 = vmatpush.bf16.msra.mxu1 %v2361_v58  ;;  %v3048_v56 = vld [vmem:[#allocation5 + $0x6a8] sm:$0xf]  ;;  %v3429_v58 = vld [vmem:[#allocation5 + $0x6b4] sm:$0xf0]  ;;  %v2921_v62 = vor.u32 %v3397_v55, %v2920_v53 }
  0xa9   :  { %1863 = vmatpush.bf16.msra.mxu2 %v2489_v59  ;;  %v3176_v59 = vld [vmem:[#allocation5 + $0x7a8] sm:$0xf]  ;;  %v3461_v60 = vld [vmem:[#allocation5 + $0x7b4] sm:$0xf0] }
  0xaa   :  { %1876 = vmatpush.bf16.msra.mxu3 %v2617_v63  ;;  %v3049_v63 = vor.u32 %v3429_v58, %v3048_v56  ;;  %v2776_v0 = vld [vmem:[#allocation5 + $0x488] sm:$0xf]  ;;  %v3361_v1 = vld [vmem:[#allocation5 + $0x494] sm:$0xf0]  ;;  %v3177_v3 = vor.u32 %v3461_v60, %v3176_v59  ;;  %v336_v58 = vperm.slane %v3719_v44, 0 }
  0xab   :  { %1838 = vmatpush.bf16.msra.mxu0 %v2217_v8  ;;  %v2904_v2 = vld [vmem:[#allocation5 + $0x588] sm:$0xf]  ;;  %v3393_v4 = vld [vmem:[#allocation5 + $0x594] sm:$0xf0] }
  0xac   :  { %1851 = vmatpush.bf16.msra.mxu1 %v2345_v11  ;;  %v3032_v8 = vld [vmem:[#allocation5 + $0x688] sm:$0xf]  ;;  %v3425_v9 = vld [vmem:[#allocation5 + $0x694] sm:$0xf0]  ;;  %v2905_v13 = vor.u32 %v3393_v4, %v2904_v2 }
  0xad   :  { %1864 = vmatpush.bf16.msra.mxu2 %v2473_v12  ;;  %v3160_v10 = vld [vmem:[#allocation5 + $0x788] sm:$0xf]  ;;  %v3457_v11 = vld [vmem:[#allocation5 + $0x794] sm:$0xf0]  ;;  %v2777_v12 = vor.u32 %v3361_v1, %v2776_v0  ;;  %v3033_v14 = vor.u32 %v3425_v9, %v3032_v8 }
  0xae   :  { %1877 = vmatpush.bf16.msra.mxu3 %v2601_v16  ;;  %v2760_v15 = vld [vmem:[#allocation5 + $0x468] sm:$0xf]  ;;  %v3357_v16 = vld [vmem:[#allocation5 + $0x474] sm:$0xf0]  ;;  %v3161_v18 = vor.u32 %v3457_v11, %v3160_v10 }
  0xaf   :  { %1839 = vmatpush.bf16.msra.mxu0 %v2201_v23  ;;  %v2888_v17 = vld [vmem:[#allocation5 + $0x568] sm:$0xf]  ;;  %v3389_v19 = vld [vmem:[#allocation5 + $0x574] sm:$0xf0]  ;;  %v2761_v25 = vor.u32 %v3357_v16, %v2760_v15  ;;  %v3715_v26 = vpop.f32.mrf.mxu1  ;;  %v2314_v15 = vld [vmem:[#allocation5 + $0xf8] sm:$0xf0] }
  0xb0   :  { %1852 = vmatpush.bf16.msra.mxu1 %v2329_v27  ;;  %v3016_v20 = vld [vmem:[#allocation5 + $0x668] sm:$0xf]  ;;  %v3421_v21 = vld [vmem:[#allocation5 + $0x674] sm:$0xf0]  ;;  %v2889_v27 = vor.u32 %v3389_v19, %v2888_v17  ;;  %v3275_v16 = vld [vmem:[#allocation5 + $0x1ec] sm:$0xf] }
  0xb1   :  { %1865 = vmatpush.bf16.msra.mxu2 %v2457_v28  ;;  %v3144_v22 = vld [vmem:[#allocation5 + $0x768] sm:$0xf]  ;;  %v3453_v23 = vld [vmem:[#allocation5 + $0x774] sm:$0xf0]  ;;  %v3017_v28 = vor.u32 %v3421_v21, %v3016_v20  ;;  %v3307_v19 = vld [vmem:[#allocation5 + $0x2ec] sm:$0xf] }
  0xb2   :  { %1878 = vmatpush.bf16.msra.mxu3 %v2585_v32  ;;  %1840 = vmatmul.bf16.vlgmr.msra.gmra.mxu0 %v3682_v5  ;;  %v2744_v29 = vld [vmem:[#allocation5 + $0x448] sm:$0xf]  ;;  %v3353_v30 = vld [vmem:[#allocation5 + $0x454] sm:$0xf0]  ;;  %v2570_v20 = vld [vmem:[#allocation5 + $0x2f8] sm:$0xf0] }
  0xb3   :  { %1884 = vmatpush.bf16.msrb.mxu0 %v2825_v33  ;;  %1853 = vmatmul.bf16.vlgmr.msra.gmra.mxu1 %v3686_v7  ;;  %v2872_v32 = vld [vmem:[#allocation5 + $0x548] sm:$0xf]  ;;  %v3417_v39 = vld [vmem:[#allocation5 + $0x654] sm:$0xf0]  ;;  %v2745_v43 = vor.u32 %v3353_v30, %v2744_v29 }
  0xb4   :  { %1897 = vmatpush.bf16.msrb.mxu1 %v2953_v34  ;;  %1866 = vmatmul.bf16.vlgmr.msra.gmra.mxu2 %v3679_v57  ;;  %v3145_v34 = vor.u32 %v3453_v23, %v3144_v22  ;;  %v3000_v38 = vld [vmem:[#allocation5 + $0x648] sm:$0xf]  ;;  %v3381_v51 = vld [vmem:[#allocation5 + $0x534] sm:$0xf0]  ;;  %v3339_v23 = vld [vmem:[#allocation5 + $0x3ec] sm:$0xf] }
  0xb5   :  { %1910 = vmatpush.bf16.msrb.mxu2 %v3081_v37  ;;  %1879 = vmatmul.bf16.vlgmr.msra.gmra.mxu3 %v3684_v6  ;;  %v3385_v37 = vld [vmem:[#allocation5 + $0x554] sm:$0xf0]  ;;  %v3128_v41 = vld [vmem:[#allocation5 + $0x748] sm:$0xf]  ;;  %v3001_v46 = vor.u32 %v3417_v39, %v3000_v38  ;;  %v3271_v38 = vld [vmem:[#allocation5 + $0x1cc] sm:$0xf] }
  0xb6   :  { %1923 = vmatpush.bf16.msrb.mxu3 %v3209_v42  ;;  %v3449_v42 = vld [vmem:[#allocation5 + $0x754] sm:$0xf0]  ;;  %v2873_v45 = vor.u32 %v3385_v37, %v2872_v32  ;;  %v2728_v47 = vld [vmem:[#allocation5 + $0x428] sm:$0xf]  ;;  %v2573_v32 = vor.u32 %v3307_v19, %v2570_v20  ;;  %v2298_v37 = vld [vmem:[#allocation5 + $0xd8] sm:$0xf0] }
  0xb7   :  { %1885 = vmatpush.bf16.msrb.mxu0 %v2809_v48  ;;  %v3349_v48 = vld [vmem:[#allocation5 + $0x434] sm:$0xf0]  ;;  %v2984_v52 = vld [vmem:[#allocation5 + $0x628] sm:$0xf]  ;;  %v3259_v19 = vld [vmem:[#allocation5 + $0x16c] sm:$0xf] }
  0xb8   :  { %1898 = vmatpush.bf16.msrb.mxu1 %v2937_v49  ;;  %v2856_v49 = vld [vmem:[#allocation5 + $0x528] sm:$0xf]  ;;  %v3413_v53 = vld [vmem:[#allocation5 + $0x634] sm:$0xf0]  ;;  %v2729_v60 = vor.u32 %v3349_v48, %v2728_v47 }
  0xb9   :  { %1911 = vmatpush.bf16.msrb.mxu2 %v3065_v50  ;;  %v3129_v50 = vor.u32 %v3449_v42, %v3128_v41  ;;  %v3112_v55 = vld [vmem:[#allocation5 + $0x728] sm:$0xf]  ;;  %v3445_v56 = vld [vmem:[#allocation5 + $0x734] sm:$0xf0]  ;;  %v2857_v0 = vor.u32 %v3381_v51, %v2856_v49  ;;  %v2985_v1 = vor.u32 %v3413_v53, %v2984_v52  ;;  %v2426_v41 = vld [vmem:[#allocation5 + $0x1d8] sm:$0xf0] }
  0xba   :  { %1924 = vmatpush.bf16.msrb.mxu3 %v3193_v54  ;;  %v1633_v24 = vpop.f32.mrf.mxu0  ;;  %v3721_v54 = vpop.f32.mrf.mxu3  ;;  %v2840_v2 = vld [vmem:[#allocation5 + $0x508] sm:$0xf]  ;;  %v3113_v9 = vor.u32 %v3445_v56, %v3112_v55  ;;  %v3409_v10 = vld [vmem:[#allocation5 + $0x614] sm:$0xf0]  ;;  %v3303_v42 = vld [vmem:[#allocation5 + $0x2cc] sm:$0xf]  ;;  %v2429_v48 = vor.u32 %v3271_v38, %v2426_v41 }
  0xbb   :  { %1886 = vmatpush.bf16.msrb.mxu0 %v2793_v61  ;;  %v2712_v61 = vld [vmem:[#allocation5 + $0x408] sm:$0xf]  ;;  %v2282_v51 = vld [vmem:[#allocation5 + $0xb8] sm:$0xf0]  ;;  %v3267_v52 = vld [vmem:[#allocation5 + $0x1ac] sm:$0xf] }
  0xbc   :  { %1899 = vmatpush.bf16.msrb.mxu1 %v2921_v62  ;;  %v3345_v62 = vld [vmem:[#allocation5 + $0x414] sm:$0xf0]  ;;  %v2968_v4 = vld [vmem:[#allocation5 + $0x608] sm:$0xf]  ;;  %v2410_v55 = vld [vmem:[#allocation5 + $0x1b8] sm:$0xf0] }
  0xbd   :  { %1912 = vmatpush.bf16.msrb.mxu2 %v3049_v63  ;;  %v3717_v33 = vpop.f32.mrf.mxu2  ;;  %v1648_v63 = vpop.f32.mrf.mxu1  ;;  %v3096_v11 = vld [vmem:[#allocation5 + $0x708] sm:$0xf]  ;;  %v2713_v17 = vor.u32 %v3345_v62, %v2712_v61  ;;  %v2969_v22 = vor.u32 %v3409_v10, %v2968_v4  ;;  %v3299_v56 = vld [vmem:[#allocation5 + $0x2ac] sm:$0xf]  ;;  %v2413_v62 = vor.u32 %v3267_v52, %v2410_v55  ;;  %v2394_v4 = vld [vmem:[#allocation5 + $0x198] sm:$0xf0] }
  0xbe   :  { %1925 = vmatpush.bf16.msrb.mxu3 %v3177_v3  ;;  %v3377_v3 = vld [vmem:[#allocation5 + $0x514] sm:$0xf0]  ;;  %v3327_v10 = vld [vmem:[#allocation5 + $0x38c] sm:$0xf]  ;;  %v2218_v55 = vld [vmem:[#allocation5 + $0x38] sm:$0xf0] }
  0xbf   :  { %1887 = vmatpush.bf16.msrb.mxu0 %v2777_v12  ;;  %v3441_v12 = vld [vmem:[#allocation5 + $0x714] sm:$0xf0]  ;;  %v2841_v21 = vor.u32 %v3377_v3, %v2840_v2  ;;  %v3263_v2 = vld [vmem:[#allocation5 + $0x18c] sm:$0xf] }
  0xc0   :  { %1900 = vmatpush.bf16.msrb.mxu1 %v2905_v13  ;;  %v1634_v13 = vadd.f32 %v1633_v24, %v336_v58  ;;  %v2538_v58 = vld [vmem:[#allocation5 + $0x2b8] sm:$0xf0]  ;;  %v3255_v38 = vld [vmem:[#allocation5 + $0x14c] sm:$0xf] }
  0xc1   :  { %1913 = vmatpush.bf16.msrb.mxu2 %v3033_v14  ;;  %v3243_v14 = vld [vmem:[#allocation5 + $0xec] sm:$0xf]  ;;  %v2541_v63 = vor.u32 %v3299_v56, %v2538_v58  ;;  %v2346_v58 = vld [vmem:[#allocation5 + $0x138] sm:$0xf0] }
  0xc2   :  { %1926 = vmatpush.bf16.msrb.mxu3 %v3161_v18  ;;  %v1635_v59 = vpop.f32.mrf.mxu0  ;;  %v2442_v18 = vld [vmem:[#allocation5 + $0x1f8] sm:$0xf0]  ;;  %v1674_v29 = vpop.f32.mrf.mxu3  ;;  %v1647_v24 = vadd.f32 %v3715_v26, %v1634_v13  ;;  %v3251_v56 = vld [vmem:[#allocation5 + $0x12c] sm:$0xf] }
  0xc3   :  { %1888 = vmatpush.bf16.msrb.mxu0 %v2761_v25  ;;  %v2698_v25 = vld [vmem:[#allocation5 + $0x3f8] sm:$0xf0]  ;;  %v2445_v30 = vor.u32 %v3275_v16, %v2442_v18  ;;  %v3331_v59 = vld [vmem:[#allocation5 + $0x3ac] sm:$0xf] }
  0xc4   :  { %1901 = vmatpush.bf16.msrb.mxu1 %v2889_v27  ;;  %v3097_v27 = vor.u32 %v3441_v12, %v3096_v11  ;;  %v2701_v39 = vor.u32 %v3339_v23, %v2698_v25  ;;  %v1660_v26 = vadd.f32 %v3717_v33, %v1647_v24  ;;  %v2650_v11 = vld [vmem:[#allocation5 + $0x398] sm:$0xf0] }
  0xc5   :  { %1914 = vmatpush.bf16.msrb.mxu2 %v3017_v28  ;;  %v1661_v8 = vpop.f32.mrf.mxu2  ;;  %v2317_v28 = vor.u32 %v3243_v14, %v2314_v15  ;;  %v2250_v18 = vld [vmem:[#allocation5 + $0x78] sm:$0xf0]  ;;  %v2653_v20 = vor.u32 %v3327_v10, %v2650_v11  ;;  %v3279_v10 = vld [vmem:[#allocation5 + $0x20c] sm:$0xf] }
  0xc6   :  { %1927 = vmatpush.bf16.msrb.mxu3 %v3145_v34  ;;  %v3239_v34 = vld [vmem:[#allocation5 + $0xcc] sm:$0xf]  ;;  %v1673_v61 = vadd.f32 %v3721_v54, %v1660_v26  ;;  %v2397_v54 = vor.u32 %v3263_v2, %v2394_v4  ;;  %v2506_v23 = vld [vmem:[#allocation5 + $0x278] sm:$0xf0] }
  0xc7   :  { %1889 = vmatpush.bf16.msrb.mxu0 %v2745_v43  ;;  %v2554_v43 = vld [vmem:[#allocation5 + $0x2d8] sm:$0xf0]  ;;  %v2301_v47 = vor.u32 %v3239_v34, %v2298_v37  ;;  %v3295_v8 = vld [vmem:[#allocation5 + $0x28c] sm:$0xf] }
  0xc8   :  { %1902 = vmatpush.bf16.msrb.mxu1 %v2873_v45  ;;  %v3335_v45 = vld [vmem:[#allocation5 + $0x3cc] sm:$0xf]  ;;  %v2557_v49 = vor.u32 %v3303_v42, %v2554_v43  ;;  %v2234_v37 = vld [vmem:[#allocation5 + $0x58] sm:$0xf0] }
  0xc9   :  { %1915 = vmatpush.bf16.msrb.mxu2 %v3001_v46  ;;  %v2682_v46 = vld [vmem:[#allocation5 + $0x3d8] sm:$0xf0]  ;;  %v3223_v34 = vld [vmem:[#allocation5 + $0x4c] sm:$0xf] }
  0xca   :  { %1928 = vmatpush.bf16.msrb.mxu3 %v3129_v50  ;;  %v3235_v50 = vld [vmem:[#allocation5 + $0xac] sm:$0xf]  ;;  %v2685_v53 = vor.u32 %v3335_v45, %v2682_v46  ;;  %v2362_v43 = vld [vmem:[#allocation5 + $0x158] sm:$0xf0] }
  0xcb   :  { %1890 = vmatpush.bf16.msrb.mxu0 %v2729_v60  ;;  %v2666_v60 = vld [vmem:[#allocation5 + $0x3b8] sm:$0xf0]  ;;  %v2285_v33 = vor.u32 %v3235_v50, %v2282_v51  ;;  %v3287_v45 = vld [vmem:[#allocation5 + $0x24c] sm:$0xf]  ;;  %v2365_v52 = vor.u32 %v3255_v38, %v2362_v43 }
  0xcc   :  { %1903 = vmatpush.bf16.msrb.mxu1 %v2857_v0  ;;  %v3231_v0 = vld [vmem:[#allocation5 + $0x8c] sm:$0xf]  ;;  %v2669_v3 = vor.u32 %v3331_v59, %v2666_v60  ;;  %v2490_v46 = vld [vmem:[#allocation5 + $0x258] sm:$0xf0] }
  0xcd   :  { %1916 = vmatpush.bf16.msrb.mxu2 %v2985_v1  ;;  %v2266_v1 = vld [vmem:[#allocation5 + $0x98] sm:$0xf0]  ;;  %v3219_v50 = vld [vmem:[#allocation5 + $0x2c] sm:$0xf] }
  0xce   :  { %1929 = vmatpush.bf16.msrb.mxu3 %v3113_v9  ;;  %v2522_v9 = vld [vmem:[#allocation5 + $0x298] sm:$0xf0]  ;;  %v2269_v12 = vor.u32 %v3231_v0, %v2266_v1  ;;  %v2221_v0 = vor.u32 %v3219_v50, %v2218_v55  ;;  %v3215_v1 = vld [vmem:[#allocation5 + $0xc] sm:$0xf] }
  0xcf   :  { %1891 = vmatpush.bf16.msrb.mxu0 %v2713_v17  ;;  %v2525_v14 = vor.u32 %v3295_v8, %v2522_v9  ;;  %v3227_v17 = vld [vmem:[#allocation5 + $0x6c] sm:$0xf]  ;;  %v2618_v26 = vld [vmem:[#allocation5 + $0x358] sm:$0xf0] }
  0xd0   :  { %1904 = vmatpush.bf16.msrb.mxu1 %v2841_v21  ;;  %v1698_v16 = vpop.f32.mrf.mxu1  ;;  %v2378_v21 = vld [vmem:[#allocation5 + $0x178] sm:$0xf0]  ;;  %v2253_v29 = vor.u32 %v3227_v17, %v2250_v18  ;;  %v3247_v8 = vld [vmem:[#allocation5 + $0x10c] sm:$0xf] }
  0xd1   :  { %1917 = vmatpush.bf16.msrb.mxu2 %v2969_v22  ;;  %v3291_v22 = vld [vmem:[#allocation5 + $0x26c] sm:$0xf]  ;;  %v2381_v24 = vor.u32 %v3259_v19, %v2378_v21  ;;  %v2202_v2 = vld [vmem:[#allocation5 + $0x18] sm:$0xf0] }
  0xd2   :  { %1930 = vmatpush.bf16.msrb.mxu3 %v3097_v27  ;;  %1892 = vmatmul.bf16.vlgmr.msrb.gmra.mxu0 %v3693_v35  ;;  %v1685_v13 = vpop.f32.mrf.mxu0  ;;  %v3323_v27 = vld [vmem:[#allocation5 + $0x36c] sm:$0xf]  ;;  %v2330_v9 = vld [vmem:[#allocation5 + $0x118] sm:$0xf0]  ;;  %v2205_v19 = vor.u32 %v3215_v1, %v2202_v2 }
  0xd3   :  { %1936 = vmatpush.bf16.msra.mxu0 %v2317_v28  ;;  %1905 = vmatmul.bf16.vlgmr.msrb.gmra.mxu1 %v3697_v40  ;;  %v1686_v15 = vadd.f32 %v1685_v13, %v1673_v61  ;;  %v2634_v28 = vld [vmem:[#allocation5 + $0x378] sm:$0xf0]  ;;  %v3403_v18 = vld [vmem:[#allocation5 + $0x5ec] sm:$0xf] }
  0xd4   :  { %1949 = vmatpush.bf16.msra.mxu1 %v2445_v30  ;;  %1918 = vmatmul.bf16.vlgmr.msrb.gmra.mxu2 %v3691_v31  ;;  %v2509_v30 = vor.u32 %v3291_v22, %v2506_v23  ;;  %v2474_v61 = vld [vmem:[#allocation5 + $0x238] sm:$0xf0]  ;;  %v3435_v21 = vld [vmem:[#allocation5 + $0x6ec] sm:$0xf]  ;;  %v2333_v23 = vor.u32 %v3247_v8, %v2330_v9 }
  0xd5   :  { %1962 = vmatpush.bf16.msra.mxu2 %v2573_v32  ;;  %1931 = vmatmul.bf16.vlgmr.msrb.gmra.mxu3 %v3695_v36  ;;  %v1699_v25 = vadd.f32 %v1698_v16, %v1686_v15  ;;  %v2458_v13 = vld [vmem:[#allocation5 + $0x218] sm:$0xf0]  ;;  %v3371_v16 = vld [vmem:[#allocation5 + $0x4ec] sm:$0xf] }
  0xd6   :  { %1975 = vmatpush.bf16.msra.mxu3 %v2701_v39  ;;  %v2637_v39 = vor.u32 %v3323_v27, %v2634_v28  ;;  %v2826_v17 = vld [vmem:[#allocation5 + $0x4f8] sm:$0xf0]  ;;  %v3467_v27 = vld [vmem:[#allocation5 + $0x7ec] sm:$0xf] }
  0xd7   :  { %1937 = vmatpush.bf16.msra.mxu0 %v2301_v47  ;;  %v1711_v32 = vpop.f32.mrf.mxu2  ;;  %v3319_v47 = vld [vmem:[#allocation5 + $0x34c] sm:$0xf]  ;;  %v3082_v22 = vld [vmem:[#allocation5 + $0x6f8] sm:$0xf0] }
  0xd8   :  { %1950 = vmatpush.bf16.msra.mxu1 %v2429_v48  ;;  %v1712_v41 = vadd.f32 %v1711_v32, %v1699_v25  ;;  %v1700_v59 = vpop.f32.mrf.mxu1  ;;  %v2621_v60 = vor.u32 %v3319_v47, %v2618_v26  ;;  %v2461_v25 = vor.u32 %v3279_v10, %v2458_v13  ;;  %v3210_v28 = vld [vmem:[#allocation5 + $0x7f8] sm:$0xf0]  ;;  %v3085_v32 = vor.u32 %v3435_v21, %v3082_v22  ;;  %v3399_v38 = vld [vmem:[#allocation5 + $0x5cc] sm:$0xf] }
  0xd9   :  { %1963 = vmatpush.bf16.msra.mxu2 %v2557_v49  ;;  %v2237_v49 = vor.u32 %v3223_v34, %v2234_v37  ;;  %v3367_v34 = vld [vmem:[#allocation5 + $0x4cc] sm:$0xf]  ;;  %v2810_v37 = vld [vmem:[#allocation5 + $0x4d8] sm:$0xf0] }
  0xda   :  { %1976 = vmatpush.bf16.msra.mxu3 %v2685_v53  ;;  %v1724_v42 = vpop.f32.mrf.mxu3  ;;  %v1687_v51 = vpop.f32.mrf.mxu0  ;;  %v2493_v53 = vor.u32 %v3287_v45, %v2490_v46  ;;  %v3066_v43 = vld [vmem:[#allocation5 + $0x6d8] sm:$0xf0]  ;;  %v3463_v45 = vld [vmem:[#allocation5 + $0x7cc] sm:$0xf]  ;;  %v2813_v47 = vor.u32 %v3367_v34, %v2810_v37 }
  0xdb   :  { %1938 = vmatpush.bf16.msra.mxu0 %v2285_v33  ;;  %v3731_v48 = vadd.f32 %v1724_v42, %v1712_v41  ;;  %v3283_v33 = vld [vmem:[#allocation5 + $0x22c] sm:$0xf]  ;;  %v2938_v41 = vld [vmem:[#allocation5 + $0x5d8] sm:$0xf0] }
  0xdc   :  { %1951 = vmatpush.bf16.msra.mxu1 %v2413_v62  ;;  %v3315_v62 = vld [vmem:[#allocation5 + $0x32c] sm:$0xf]  ;;  %v2477_v4 = vor.u32 %v3283_v33, %v2474_v61  ;;  %v3194_v46 = vld [vmem:[#allocation5 + $0x7d8] sm:$0xf0]  ;;  %v2941_v26 = vor.u32 %v3399_v38, %v2938_v41 }
  0xdd   :  { %1964 = vmatpush.bf16.msra.mxu2 %v2541_v63  ;;  %2040 = vst [vmem:[#allocation8] sm:$0xff] %v3731_v48  ;;  %v2602_v63 = vld [vmem:[#allocation5 + $0x338] sm:$0xf0]  ;;  %v3431_v42 = vld [vmem:[#allocation5 + $0x6cc] sm:$0xf] }
  0xde   :  { %1977 = vmatpush.bf16.msra.mxu3 %v2669_v3  ;;  %v2349_v3 = vor.u32 %v3251_v56, %v2346_v58  ;;  %v3363_v50 = vld [vmem:[#allocation5 + $0x4ac] sm:$0xf]  ;;  %v2794_v51 = vld [vmem:[#allocation5 + $0x4b8] sm:$0xf0] }
  0xdf   :  { %1939 = vmatpush.bf16.msra.mxu0 %v2269_v12  ;;  %v1713_v11 = vpop.f32.mrf.mxu2  ;;  %v2605_v12 = vor.u32 %v3315_v62, %v2602_v63  ;;  %v2922_v55 = vld [vmem:[#allocation5 + $0x5b8] sm:$0xf0]  ;;  %v3427_v56 = vld [vmem:[#allocation5 + $0x6ac] sm:$0xf]  ;;  %v2797_v33 = vor.u32 %v3363_v50, %v2794_v51 }
  0xe0   :  { %1952 = vmatpush.bf16.msra.mxu1 %v2397_v54  ;;  %v3311_v54 = vld [vmem:[#allocation5 + $0x30c] sm:$0xf]  ;;  %v3050_v58 = vld [vmem:[#allocation5 + $0x6b8] sm:$0xf0] }
  0xe1   :  { %1965 = vmatpush.bf16.msra.mxu2 %v2525_v14  ;;  %v2586_v14 = vld [vmem:[#allocation5 + $0x318] sm:$0xf0]  ;;  %v3459_v59 = vld [vmem:[#allocation5 + $0x7ac] sm:$0xf]  ;;  %v3053_v62 = vor.u32 %v3427_v56, %v3050_v58  ;;  %v337_v56 = vperm.slane %v3719_v44, 1 }
  0xe2   :  { %1978 = vmatpush.bf16.msra.mxu3 %v2653_v20  ;;  %v1726_v15 = vpop.f32.mrf.mxu3  ;;  %v2954_v20 = vld [vmem:[#allocation5 + $0x5f8] sm:$0xf0]  ;;  %v3359_v63 = vld [vmem:[#allocation5 + $0x48c] sm:$0xf] }
  0xe3   :  { %1940 = vmatpush.bf16.msra.mxu0 %v2253_v29  ;;  %v2589_v29 = vor.u32 %v3311_v54, %v2586_v14  ;;  %v2906_v2 = vld [vmem:[#allocation5 + $0x598] sm:$0xf0]  ;;  %v3455_v8 = vld [vmem:[#allocation5 + $0x78c] sm:$0xf] }
  0xe4   :  { %1953 = vmatpush.bf16.msra.mxu1 %v2381_v24  ;;  %v2829_v24 = vor.u32 %v3371_v16, %v2826_v17  ;;  %v3355_v11 = vld [vmem:[#allocation5 + $0x46c] sm:$0xf]  ;;  %v2890_v15 = vld [vmem:[#allocation5 + $0x578] sm:$0xf0] }
  0xe5   :  { %1966 = vmatpush.bf16.msra.mxu2 %v2509_v30  ;;  %v2957_v30 = vor.u32 %v3403_v18, %v2954_v20  ;;  %v3387_v13 = vld [vmem:[#allocation5 + $0x56c] sm:$0xf]  ;;  %v3018_v17 = vld [vmem:[#allocation5 + $0x678] sm:$0xf0] }
  0xe6   :  { %1979 = vmatpush.bf16.msra.mxu3 %v2637_v39  ;;  %v3213_v39 = vor.u32 %v3467_v27, %v3210_v28  ;;  %v3419_v16 = vld [vmem:[#allocation5 + $0x66c] sm:$0xf]  ;;  %v2893_v21 = vor.u32 %v3387_v13, %v2890_v15  ;;  %v3130_v38 = vld [vmem:[#allocation5 + $0x758] sm:$0xf0] }
  0xe7   :  { %1941 = vmatpush.bf16.msra.mxu0 %v2237_v49  ;;  %v3069_v49 = vor.u32 %v3431_v42, %v3066_v43  ;;  %v3451_v18 = vld [vmem:[#allocation5 + $0x76c] sm:$0xf]  ;;  %v3021_v22 = vor.u32 %v3419_v16, %v3018_v17  ;;  %v2858_v50 = vld [vmem:[#allocation5 + $0x538] sm:$0xf0]  ;;  %v2044_v17 = vrot.slane %v3731_v48, 4 }
  0xe8   :  { %1954 = vmatpush.bf16.msra.mxu1 %v2365_v52  ;;  %v3395_v52 = vld [vmem:[#allocation5 + $0x5ac] sm:$0xf] }
  0xe9   :  { %1967 = vmatpush.bf16.msra.mxu2 %v2493_v53  ;;  %v3197_v53 = vor.u32 %v3463_v45, %v3194_v46  ;;  %v2925_v61 = vor.u32 %v3395_v52, %v2922_v55  ;;  %v3383_v27 = vld [vmem:[#allocation5 + $0x54c] sm:$0xf]  ;;  %v2730_v46 = vld [vmem:[#allocation5 + $0x438] sm:$0xf0] }
  0xea   :  { %1980 = vmatpush.bf16.msra.mxu3 %v2621_v60  ;;  %v3178_v60 = vld [vmem:[#allocation5 + $0x7b8] sm:$0xf0]  ;;  %v3447_v37 = vld [vmem:[#allocation5 + $0x74c] sm:$0xf] }
  0xeb   :  { %1942 = vmatpush.bf16.msra.mxu0 %v2221_v0  ;;  %v2778_v0 = vld [vmem:[#allocation5 + $0x498] sm:$0xf0]  ;;  %v3181_v1 = vor.u32 %v3459_v59, %v3178_v60  ;;  %v3347_v45 = vld [vmem:[#allocation5 + $0x42c] sm:$0xf] }
  0xec   :  { %1955 = vmatpush.bf16.msra.mxu1 %v2349_v3  ;;  %v3423_v3 = vld [vmem:[#allocation5 + $0x68c] sm:$0xf]  ;;  %v2986_v52 = vld [vmem:[#allocation5 + $0x638] sm:$0xf0]  ;;  %v2733_v58 = vor.u32 %v3347_v45, %v2730_v46 }
  0xed   :  { %1968 = vmatpush.bf16.msra.mxu2 %v2477_v4  ;;  %v3034_v4 = vld [vmem:[#allocation5 + $0x698] sm:$0xf0]  ;;  %v3411_v51 = vld [vmem:[#allocation5 + $0x62c] sm:$0xf] }
  0xee   :  { %1981 = vmatpush.bf16.msra.mxu3 %v2605_v12  ;;  %v3037_v10 = vor.u32 %v3423_v3, %v3034_v4  ;;  %v2762_v12 = vld [vmem:[#allocation5 + $0x478] sm:$0xf0]  ;;  %v2989_v60 = vor.u32 %v3411_v51, %v2986_v52 }
  0xef   :  { %1943 = vmatpush.bf16.msra.mxu0 %v2205_v19  ;;  %v3738_v9 = vpop.f32.mrf.mxu0  ;;  %v3146_v19 = vld [vmem:[#allocation5 + $0x778] sm:$0xf0]  ;;  %v2765_v20 = vor.u32 %v3355_v11, %v2762_v12 }
  0xf0   :  { %1956 = vmatpush.bf16.msra.mxu1 %v2333_v23  ;;  %v3740_v54 = vpop.f32.mrf.mxu1  ;;  %v3351_v23 = vld [vmem:[#allocation5 + $0x44c] sm:$0xf]  ;;  %v3114_v55 = vld [vmem:[#allocation5 + $0x738] sm:$0xf0]  ;;  %v1738_v4 = vadd.f32 %v3738_v9, %v337_v56 }
  0xf1   :  { %1969 = vmatpush.bf16.msra.mxu2 %v2461_v25  ;;  %v2746_v25 = vld [vmem:[#allocation5 + $0x458] sm:$0xf0] }
  0xf2   :  { %1982 = vmatpush.bf16.msra.mxu3 %v2589_v29  ;;  %1944 = vmatmul.bf16.vlgmr.msra.gmra.mxu0 %v3682_v5  ;;  %v3162_v5 = vld [vmem:[#allocation5 + $0x798] sm:$0xf0]  ;;  %v3149_v29 = vor.u32 %v3451_v18, %v3146_v19  ;;  %v1751_v12 = vadd.f32 %v3740_v54, %v1738_v4 }
  0xf3   :  { %1988 = vmatpush.bf16.msrb.mxu0 %v2829_v24  ;;  %1957 = vmatmul.bf16.vlgmr.msra.gmra.mxu1 %v3686_v7  ;;  %v3165_v14 = vor.u32 %v3455_v8, %v3162_v5  ;;  %v2874_v24 = vld [vmem:[#allocation5 + $0x558] sm:$0xf0]  ;;  %v3439_v8 = vld [vmem:[#allocation5 + $0x70c] sm:$0xf] }
  0xf4   :  { %2001 = vmatpush.bf16.msrb.mxu1 %v2957_v30  ;;  %1970 = vmatmul.bf16.vlgmr.msra.gmra.mxu2 %v3679_v57  ;;  %v3391_v57 = vld [vmem:[#allocation5 + $0x58c] sm:$0xf]  ;;  %v2877_v42 = vor.u32 %v3383_v27, %v2874_v24  ;;  %v3098_v5 = vld [vmem:[#allocation5 + $0x718] sm:$0xf0] }
  0xf5   :  { %2014 = vmatpush.bf16.msrb.mxu2 %v3085_v32  ;;  %1983 = vmatmul.bf16.vlgmr.msra.gmra.mxu3 %v3684_v6  ;;  %v2781_v6 = vor.u32 %v3359_v63, %v2778_v0  ;;  %v2909_v7 = vor.u32 %v3391_v57, %v2906_v2  ;;  %v3415_v30 = vld [vmem:[#allocation5 + $0x64c] sm:$0xf]  ;;  %v3002_v32 = vld [vmem:[#allocation5 + $0x658] sm:$0xf0]  ;;  %v3101_v11 = vor.u32 %v3439_v8, %v3098_v5 }
  0xf6   :  { %2027 = vmatpush.bf16.msrb.mxu3 %v3213_v39  ;;  %v2749_v39 = vor.u32 %v3351_v23, %v2746_v25  ;;  %v3005_v43 = vor.u32 %v3415_v30, %v3002_v32  ;;  %v2842_v57 = vld [vmem:[#allocation5 + $0x518] sm:$0xf0] }
  0xf7   :  { %1989 = vmatpush.bf16.msrb.mxu0 %v2813_v47  ;;  %v1763_v28 = vpop.f32.mrf.mxu2  ;;  %v1739_v41 = vpop.f32.mrf.mxu0  ;;  %v3379_v47 = vld [vmem:[#allocation5 + $0x52c] sm:$0xf]  ;;  %v2970_v2 = vld [vmem:[#allocation5 + $0x618] sm:$0xf0] }
  0xf8   :  { %2002 = vmatpush.bf16.msrb.mxu1 %v2941_v26  ;;  %v1776_v34 = vpop.f32.mrf.mxu3  ;;  %v1752_v26 = vpop.f32.mrf.mxu1  ;;  %v2861_v59 = vor.u32 %v3379_v47, %v2858_v50  ;;  %v1764_v13 = vadd.f32 %v1763_v28, %v1751_v12 }
  0xf9   :  { %2015 = vmatpush.bf16.msrb.mxu2 %v3069_v49  ;;  %v3133_v49 = vor.u32 %v3447_v37, %v3130_v38 }
  0xfa   :  { %2028 = vmatpush.bf16.msrb.mxu3 %v3197_v53  ;;  %v3443_v53 = vld [vmem:[#allocation5 + $0x72c] sm:$0xf]  ;;  %v1777_v9 = vadd.f32 %v1776_v34, %v1764_v13 }
  0xfb   :  { %1990 = vmatpush.bf16.msrb.mxu0 %v2797_v33  ;;  %v3343_v33 = vld [vmem:[#allocation5 + $0x40c] sm:$0xf]  ;;  %v3117_v0 = vor.u32 %v3443_v53, %v3114_v55 }
  0xfc   :  { %2003 = vmatpush.bf16.msrb.mxu1 %v2925_v61  ;;  %v2714_v61 = vld [vmem:[#allocation5 + $0x418] sm:$0xf0] }
  0xfd   :  { %2016 = vmatpush.bf16.msrb.mxu2 %v3053_v62  ;;  %v3375_v62 = vld [vmem:[#allocation5 + $0x50c] sm:$0xf] }
  0xfe   :  { %2029 = vmatpush.bf16.msrb.mxu3 %v3181_v1  ;;  %v3407_v1 = vld [vmem:[#allocation5 + $0x60c] sm:$0xf] }
  0xff   :  { %1991 = vmatpush.bf16.msrb.mxu0 %v2781_v6  ;;  %v1765_v63 = vpop.f32.mrf.mxu2  ;;  %v2717_v6 = vor.u32 %v3343_v33, %v2714_v61 }
 0x100   :  { %2004 = vmatpush.bf16.msrb.mxu1 %v2909_v7  ;;  %v1778_v3 = vpop.f32.mrf.mxu3  ;;  %v2845_v7 = vor.u32 %v3375_v62, %v2842_v57 }
 0x101   :  { %2017 = vmatpush.bf16.msrb.mxu2 %v3037_v10  ;;  %v2973_v10 = vor.u32 %v3407_v1, %v2970_v2 }
 0x102   :  { %2030 = vmatpush.bf16.msrb.mxu3 %v3165_v14  ;;  %v2068_v14 = vmul.f32 %v3731_v48, %v3731_v48 }
 0x103   :  { %1992 = vmatpush.bf16.msrb.mxu0 %v2765_v20 }
 0x104   :  { %2005 = vmatpush.bf16.msrb.mxu1 %v2893_v21  ;;  %v2072_v19 = vrot.slane %v2068_v14, 4 }
 0x105   :  { %2018 = vmatpush.bf16.msrb.mxu2 %v3021_v22 }
 0x106   :  { %2031 = vmatpush.bf16.msrb.mxu3 %v3149_v29  ;;  %v2073_v22 = vadd.f32 %v2072_v19, %v2068_v14 }
 0x107   :  { %1993 = vmatpush.bf16.msrb.mxu0 %v2749_v39 }
 0x108   :  { %2006 = vmatpush.bf16.msrb.mxu1 %v2877_v42  ;;  %v2074_v29 = vrot.slane %v2073_v22, 2 }
 0x109   :  { %2019 = vmatpush.bf16.msrb.mxu2 %v3005_v43 }
 0x10a   :  { %2032 = vmatpush.bf16.msrb.mxu3 %v3133_v49  ;;  %v2075_v41 = vadd.f32 %v2074_v29, %v2073_v22 }
 0x10b   :  { %1994 = vmatpush.bf16.msrb.mxu0 %v2733_v58 }
 0x10c   :  { %2007 = vmatpush.bf16.msrb.mxu1 %v2861_v59  ;;  %v2076_v47 = vrot.slane %v2075_v41, 1 }
 0x10d   :  { %2020 = vmatpush.bf16.msrb.mxu2 %v2989_v60 }
 0x10e   :  { %2033 = vmatpush.bf16.msrb.mxu3 %v3117_v0  ;;  %v2077_v53 = vadd.f32 %v2076_v47, %v2075_v41  ;;  %v338_v0 = vperm.slane %v3719_v44, 2 }
 0x10f   :  { %1995 = vmatpush.bf16.msrb.mxu0 %v2717_v6  ;;  %v1789_v15 = vpop.f32.mrf.mxu0 }
 0x110   :  { %2008 = vmatpush.bf16.msrb.mxu1 %v2845_v7  ;;  %v1790_v16 = vadd.f32 %v1789_v15, %v1777_v9  ;;  %v1802_v54 = vpop.f32.mrf.mxu1 }
 0x111   :  { %2021 = vmatpush.bf16.msrb.mxu2 %v2973_v10 }
 0x112   :  { %2034 = vmatpush.bf16.msrb.mxu3 %v3101_v11  ;;  %1996 = vmatmul.bf16.vlgmr.msrb.gmra.mxu0 %v3693_v35  ;;  %v1803_v18 = vadd.f32 %v1802_v54, %v1790_v16  ;;  %v2045_v35 = vadd.f32 %v2044_v17, %v3731_v48 }
 0x113   :  { %2009 = vmatmul.bf16.vlgmr.msrb.gmra.mxu1 %v3697_v40 }
 0x114   :  { %2022 = vmatmul.bf16.vlgmr.msrb.gmra.mxu2 %v3691_v31  ;;  %v2046_v25 = vrot.slane %v2045_v35, 2 }
 0x115   :  { %2035 = vmatmul.bf16.vlgmr.msrb.gmra.mxu3 %v3695_v36 }
 0x116   :  { %v2047_v34 = vadd.f32 %v2046_v25, %v2045_v35 }
 0x117   :  { %v1815_v20 = vpop.f32.mrf.mxu2  ;;  %v1791_v23 = vpop.f32.mrf.mxu0 }
 0x118   :  { %v1816_v21 = vadd.f32 %v1815_v20, %v1803_v18  ;;  %v1828_v40 = vpop.f32.mrf.mxu3  ;;  %v1804_v36 = vpop.f32.mrf.mxu1  ;;  %v2048_v43 = vrot.slane %v2047_v34, 1  ;;  %v2100_v23 = vlaneseq }
 0x11a   :  { %v1829_v31 = vadd.f32 %v1828_v40, %v1816_v21  ;;  %v2049_v50 = vadd.f32 %v2048_v43, %v2047_v34  ;;  %v339_v40 = vperm.slane %v3719_v44, 3  ;;  %vm3759_vm1 = vcmp.lt.s32.totalorder %v2100_v23, 512 }
 0x11c   :  { %2041 = vst [vmem:[#allocation8 + $0x8] sm:$0xff] %v1829_v31  ;;  %v2050_v27 = vrot.slane %v1829_v31, 4  ;;  %v2069_v28 = vmul.f32 %v1829_v31, %v1829_v31 }
 0x11e   :  { %v2051_v24 = vadd.f32 %v2050_v27, %v1829_v31  ;;  %v2078_v30 = vrot.slane %v2069_v28, 4  ;;  %v3636_v27 = vmov 0.0  }
 0x11f   :  { %v1817_v32 = vpop.f32.mrf.mxu2  ;;  %2104 = vst.msk [vmem:[#allocation9] sm:$0xf] %vm3759_vm1, %v3636_v27 }
 0x120   :  { %v2052_v37 = vrot.slane %v2051_v24, 2  ;;  %v2079_v38 = vadd.f32 %v2078_v30, %v2069_v28  ;;  %v1830_v39 = vpop.f32.mrf.mxu3  ;;  %2105 = vst.msk [vmem:[#allocation11] sm:$0xf] %vm3759_vm1, %v3636_v27 }
 0x122   :  { %v2053_v48 = vadd.f32 %v2052_v37, %v2051_v24  ;;  %v2080_v42 = vrot.slane %v2079_v38, 2 }
 0x124   :  { %v2054_v45 = vrot.slane %v2053_v48, 1  ;;  %v2081_v46 = vadd.f32 %v2080_v42, %v2079_v38 }
 0x126   :  { %v2055_v26 = vadd.f32 %v2054_v45, %v2053_v48  ;;  %v2082_v49 = vrot.slane %v2081_v46, 1 }
 0x128   :  { %v2083_v51 = vadd.f32 %v2082_v49, %v2081_v46  ;;  %v2111_v52 = vrot.slane %v2055_v26, 7 }
 0x12a   :  { %v2132_v55 = vrot.slane %v2083_v51, 7  ;;  %v3753_v56 = vsel %vm2114_vm0, %v2049_v50, %v2111_v52 }
 0x12c   :  { %v3755_v58 = vsel %vm2114_vm0, %v2077_v53, %v2132_v55 }
 0x12f   :  { %v1841_v59 = vpop.f32.mrf.mxu0 }
 0x130   :  { %v1854_v60 = vpop.f32.mrf.mxu1  ;;  %v1842_v2 = vadd.f32 %v1841_v59, %v338_v0 }
 0x132   :  { %v1855_v3 = vadd.f32 %v1854_v60, %v1842_v2 }
 0x137   :  { %v1867_v33 = vpop.f32.mrf.mxu2  ;;  %v1843_v62 = vpop.f32.mrf.mxu0 }
 0x138   :  { %v1880_v61 = vpop.f32.mrf.mxu3  ;;  %v1856_v63 = vpop.f32.mrf.mxu1  ;;  %v1868_v4 = vadd.f32 %v1867_v33, %v1855_v3 }
 0x13a   :  { %v1881_v8 = vadd.f32 %v1880_v61, %v1868_v4 }
 0x13f   :  { %v1869_v57 = vpop.f32.mrf.mxu2 }
 0x140   :  { %v1882_v1 = vpop.f32.mrf.mxu3 }
 0x14f   :  { %v1893_v5 = vpop.f32.mrf.mxu0 }
 0x150   :  { %v1894_v6 = vadd.f32 %v1893_v5, %v1881_v8  ;;  %v1906_v7 = vpop.f32.mrf.mxu1 }
 0x152   :  { %v1907_v10 = vadd.f32 %v1906_v7, %v1894_v6 }
 0x157   :  { %v1919_v11 = vpop.f32.mrf.mxu2  ;;  %v1895_v14 = vpop.f32.mrf.mxu0 }
 0x158   :  { %v1920_v12 = vadd.f32 %v1919_v11, %v1907_v10  ;;  %v1932_v13 = vpop.f32.mrf.mxu3  ;;  %v1908_v15 = vpop.f32.mrf.mxu1 }
 0x15a   :  { %v1933_v9 = vadd.f32 %v1932_v13, %v1920_v12  ;;  %v2106_v13 = vld [vmem:[#allocation9] sm:$0xf] }
 0x15c   :  { %2042 = vst [vmem:[#allocation8 + $0x10] sm:$0xff] %v1933_v9  ;;  %v2070_v24 = vmul.f32 %v1933_v9, %v1933_v9  ;;  %v2056_v30 = vrot.slane %v1933_v9, 4 }
 0x15e   :  { %v2084_v37 = vrot.slane %v2070_v24, 4  ;;  %v2057_v39 = vadd.f32 %v2056_v30, %v1933_v9 }
 0x15f   :  { %v1921_v16 = vpop.f32.mrf.mxu2 }
 0x160   :  { %v1934_v54 = vpop.f32.mrf.mxu3  ;;  %v2085_v41 = vadd.f32 %v2084_v37, %v2070_v24  ;;  %v2058_v43 = vrot.slane %v2057_v39, 2 }
 0x161   :  { %v2127_v54 = vld [vmem:[#allocation11] sm:$0xf] }
 0x162   :  { %v2086_v49 = vrot.slane %v2085_v41, 2  ;;  %v2059_v51 = vadd.f32 %v2058_v43, %v2057_v39 }
 0x164   :  { %v2087_v55 = vadd.f32 %v2086_v49, %v2085_v41  ;;  %v2060_v61 = vrot.slane %v2059_v51, 1 }
 0x166   :  { %v2088_v57 = vrot.slane %v2087_v55, 1  ;;  %v2061_v3 = vadd.f32 %v2060_v61, %v2059_v51 }
 0x168   :  { %v2089_v5 = vadd.f32 %v2088_v57, %v2087_v55  ;;  %v2112_v10 = vrot.slane %v2061_v3, 6 }
 0x16a   :  { %v2133_v9 = vrot.slane %v2089_v5, 6 }
 0x16f   :  { %v1945_v17 = vpop.f32.mrf.mxu0 }
 0x170   :  { %v1958_v18 = vpop.f32.mrf.mxu1  ;;  %v1946_v36 = vadd.f32 %v1945_v17, %v339_v40 }
 0x172   :  { %v1959_v28 = vadd.f32 %v1958_v18, %v1946_v36 }
 0x177   :  { %v1971_v19 = vpop.f32.mrf.mxu2  ;;  %v1947_v35 = vpop.f32.mrf.mxu0 }
 0x178   :  { %v1984_v20 = vpop.f32.mrf.mxu3  ;;  %v1960_v21 = vpop.f32.mrf.mxu1  ;;  %v1972_v29 = vadd.f32 %v1971_v19, %v1959_v28 }
 0x17a   :  { %v1985_v44 = vadd.f32 %v1984_v20, %v1972_v29 }
 0x17f   :  { %v1973_v22 = vpop.f32.mrf.mxu2 }
 0x180   :  { %v1986_v31 = vpop.f32.mrf.mxu3 }
 0x18f   :  { %v1997_v32 = vpop.f32.mrf.mxu0 }
 0x190   :  { %v2010_v34 = vpop.f32.mrf.mxu1  ;;  %v1998_v38 = vadd.f32 %v1997_v32, %v1985_v44 }
 0x192   :  { %v2011_v48 = vadd.f32 %v2010_v34, %v1998_v38 }
 0x197   :  { %v2023_v42 = vpop.f32.mrf.mxu2  ;;  %v1999_v47 = vpop.f32.mrf.mxu0 }
 0x198   :  { %v2024_v45 = vadd.f32 %v2023_v42, %v2011_v48  ;;  %v2036_v46 = vpop.f32.mrf.mxu3  ;;  %v2012_v26 = vpop.f32.mrf.mxu1 }
 0x19a   :  { %v2037_v50 = vadd.f32 %v2036_v46, %v2024_v45 }
 0x19c   :  { %2043 = vst [vmem:[#allocation8 + $0x18] sm:$0xff] %v2037_v50  ;;  %v2062_v52 = vrot.slane %v2037_v50, 4  ;;  %v2071_v53 = vmul.f32 %v2037_v50, %v2037_v50 }
 0x19d   :  { %2151 = dma.vmem_to_hbm [thread:$0]  %s2147_s2, 512, %s2149_s11, [#allocation4]  }
 0x19e   :  { %v2063_v59 = vadd.f32 %v2062_v52, %v2037_v50  ;;  %v2090_v60 = vrot.slane %v2071_v53, 4 }
 0x19f   :  { %v2025_v33 = vpop.f32.mrf.mxu2 }
 0x1a0   :  { %v2064_v62 = vrot.slane %v2063_v59, 2  ;;  %v2091_v63 = vadd.f32 %v2090_v60, %v2071_v53  ;;  %v2038_v0 = vpop.f32.mrf.mxu3 }
 0x1a2   :  { %v2065_v1 = vadd.f32 %v2064_v62, %v2063_v59  ;;  %v2092_v2 = vrot.slane %v2091_v63, 2 }
 0x1a4   :  { %v2066_v4 = vrot.slane %v2065_v1, 1  ;;  %v2093_v8 = vadd.f32 %v2092_v2, %v2091_v63 }
 0x1a6   :  { %v2067_v6 = vadd.f32 %v2066_v4, %v2065_v1  ;;  %v2094_v7 = vrot.slane %v2093_v8, 1 }
 0x1a8   :  { %v2095_v11 = vadd.f32 %v2094_v7, %v2093_v8  ;;  %v2113_v12 = vrot.slane %v2067_v6, 5 }
 0x1aa   :  { %v2134_v14 = vrot.slane %v2095_v11, 5  ;;  %v2117_v15 = vsel %vm2116_vm2, %v2112_v10, %v2113_v12 }
 0x1ab   :  { %v2119_v16 = vsel %vm2118_vm3, %v3753_v56, %v2117_v15 }
 0x1ac   :  { %v2121_v17 = vadd.f32 %v2119_v16, %v2106_v13  ;;  %v2136_v18 = vsel %vm2116_vm2, %v2133_v9, %v2134_v14 }
 0x1ad   :  { %v2137_v19 = vsel %vm2118_vm3, %v3755_v58, %v2136_v18 }
 0x1ae   :  { %2126 = vst.msk [vmem:[#allocation9] sm:$0xf] %vm3759_vm1, %v2121_v17  ;;  %v2139_v20 = vadd.f32 %v2137_v19, %v2127_v54 }
 0x1af   :  { %2162 = dma.vmem_to_hbm [thread:$0]  %s2158_s12, 64, %s2160_s15, [#allocation10]  }
 0x1b0   :  { %2140 = vst.msk [vmem:[#allocation11] sm:$0xf] %vm3759_vm1, %v2139_v20 }
 0x1b1   :  { %2173 = dma.vmem_to_hbm [thread:$0]  %s2169_s17, 64, %s2171_s20, [#allocation10]  }
 0x1b2   :  { %3627 = dma.done.wait [#allocation4], 512  }
 0x1b3   :  { %3628 = vsyncadd [#allocation4], 4294966784 }
 0x1b4   :  { %3629 = dma.done.wait [#allocation10], 128  }
 0x1b5   :  { %3630 = vsyncadd [#allocation10], 4294967168 }
 0x1b6   :  { %2186 = vsyncpa [#allocation3], 1 }
 0x1b7   :  { %2187 = vsyncpa [#allocation6], 1 }
 0x1b8   :  { %2188 = vsyncpa [#allocation4], 1 }
 0x1b9   :  { %2189 = vsyncpa [#allocation10], 1 }

</bundles_post_ra>
